<compile_context>
chip_gen: v5e
topology: v5e:2x2
jax: 0.10.0
libtpu: 0.0.40
codegen_flags: <defaults>
</compile_context>

<pallas_src>
import functools
import math

import jax
import jax.numpy as jnp
from jax import lax
from jax.experimental import pallas as pl
from jax.experimental.pallas import tpu as pltpu


def _round_up(x, m):
    return (x + m - 1) // m * m


def _device_kind():
    try:
        return jax.devices()[0].device_kind.lower()
    except Exception:
        return ""


def _vmem_capacity_bytes():
    try:
        return int(pltpu.get_tpu_info().vmem_capacity_bytes)
    except Exception:
        return 64 * 1024 * 1024            # conservative (v7x per-TC VMEM)


def _lstm_kernel(x_ref, wx_ref, wh_ref, b_ref, h0_ref, c0_ref,
                 out_ref, hT_ref, cT_ref,
                 h_sc, c_sc, zx_sc,
                 *, hidden_p, input_p, block_t, block_b, seq_len):
    """Grid = (batch_tiles, time_blocks).  Each grid step:
      1) one MXU matmul producing the x-projection for all block_t timesteps,
      2) block_t serial recurrence steps (h @ Wh on the MXU, gates on VPU/EUP).
    h_sc / c_sc carry the state across the (sequential) time-block axis."""
    tb = pl.program_id(1)                              # time-block index
    nt = pl.num_programs(1)
    Hp = hidden_p

    @pl.when(tb == 0)
    def _():
        h_sc[...] = h0_ref[...].astype(jnp.float32)
        c_sc[...] = c0_ref[...].astype(jnp.float32)

    # ---- fused input projection: one big matmul per grid step -------------
    # (no sequential dependency -> hoisted out of the recurrence loop)
    x2d = x_ref[...].reshape(block_t * block_b, input_p)          # bf16
    zx_sc[...] = (jnp.dot(x2d, wx_ref[...],
                          preferred_element_type=jnp.float32)
                  + b_ref[...])                                   # (M, 4Hp) f32

    wh = wh_ref[...]                                              # (Hp, 4Hp) bf16
    ragged = (seq_len % block_t) != 0                             # static

    def sigmoid(v):
        # exp/divide-free sigmoid: one EUP tanh push, no Newton divide.
        return 0.5 * jnp.tanh(0.5 * v) + 0.5

    def step(j, carry):
        h, c = carry                                              # f32 (Bb, Hp)
        row = pl.multiple_of(j * block_b, block_b)
        z = zx_sc[pl.ds(row, block_b), :] + jnp.dot(
            h.astype(jnp.bfloat16), wh, preferred_element_type=jnp.float32)
        f = sigmoid(z[:, 0 * Hp:1 * Hp])               # forget gate
        i = sigmoid(z[:, 1 * Hp:2 * Hp])               # update (input) gate
        g = jnp.tanh(z[:, 2 * Hp:3 * Hp])              # cell candidates
        o = sigmoid(z[:, 3 * Hp:4 * Hp])               # output gate
        c_new = f * c + i * g
        h_new = o * jnp.tanh(c_new)
        out_ref[j] = h_new.astype(out_ref.dtype)
        if ragged:
            # Only emitted when T % block_t != 0: padded tail timesteps must
            # not advance the carry used for the final state.
            valid = (tb * block_t + j) < seq_len
            h_new = jnp.where(valid, h_new, h)
            c_new = jnp.where(valid, c_new, c)
        return (h_new, c_new)

    h, c = lax.fori_loop(0, block_t, step, (h_sc[...], c_sc[...]),
                         unroll=min(block_t, 8))
    h_sc[...] = h
    c_sc[...] = c

    @pl.when(tb == nt - 1)                             # only final state -> HBM
    def _():
        hT_ref[...] = h.astype(hT_ref.dtype)
        cT_ref[...] = c.astype(cT_ref.dtype)


def init_params(key, input_size, hidden_size):
    """Deterministic synthetic params matching UnrolledLSTMCell.__init__:
    4x nn.Linear(input+hidden -> hidden, bias=True), U(-sqrt_k, sqrt_k)."""
    sqrt_k = math.sqrt(1.0 / hidden_size)
    keys = jax.random.split(key, 8)

    def u(k, shape):
        return jax.random.uniform(k, shape, jnp.float32, -sqrt_k, sqrt_k)

    # per-gate PyTorch Linear weight is (H, I+H); gate order: f, i, g, o
    ws = [u(keys[j], (hidden_size, input_size + hidden_size)) for j in range(4)]
    bs = [u(keys[4 + j], (hidden_size,)) for j in range(4)]
    W = jnp.concatenate(ws, axis=0)                    # (4H, I+H)
    Wt = W.T                                           # (I+H, 4H)
    wx = Wt[:input_size]                               # (I, 4H)
    wh = Wt[input_size:]                               # (H, 4H)
    b = jnp.concatenate(bs)                            # (4H,)
    return wx, wh, b


def unrolled_lstm_forward(x, params, state=None, *, batch_first=True,
                          block_t=None, block_b=None, out_dtype=None):
    """Pallas forward.  x: (B, T, I) if batch_first else (T, B, I).
    Returns (outputs (T, 1, B, H), (hidden (1,B,H), cell (1,B,H)))."""
    wx, wh, b = params
    x_seq = jnp.transpose(x, (1, 0, 2)) if batch_first else x
    T, B, I = x_seq.shape
    H = wh.shape[0]
    out_dtype = x.dtype if out_dtype is None else out_dtype
    out_bytes = jnp.dtype(out_dtype).itemsize

    # ---- hardware-aligned padded layout -----------------------------------
    Hp = _round_up(H, 128)                             # lane-dense gate slices
    Bp = _round_up(B, 8)                               # full sublanes
    Ip = _round_up(I, 128)                             # clean bf16 x / Wx tiles

    kind = _device_kind()
    is_v5e = ("v5 lite" in kind) or ("v5e" in kind)
    n_tc = 2 if "7" in kind else 1                     # v7x: 2 TensorCores/chip
    max_bb = 128 if is_v5e else 256                    # MXU width per chip gen

    if block_b is None:
        block_b = min(Bp, max_bb)
        # ensure >=2 batch tiles when a second TensorCore exists (megacore)
        if n_tc >= 2 and Bp // block_b < 2 and Bp >= 16:
            block_b = max(8, _round_up(Bp // 2, 8))
    else:
        block_b = max(8, _round_up(min(block_b, Bp), 8))

    if block_t is None:
        block_t = max(1, min(T, 32))
        if T % block_t != 0:
            best = 1
            for cand in range(1, block_t + 1):
                if T % cand == 0:
                    best = cand
            if best * 2 >= block_t:     # prefer divisor of T (drops the freeze)
                block_t = best
    else:
        block_t = max(1, min(block_t, T))

    # ---- VMEM-aware tile sizing --------------------------------------------
    vmem_cap = _vmem_capacity_bytes()
    budget = int(vmem_cap * 0.70)

    def vmem_bytes(bt, bb):
        xb = 2 * bt * bb * Ip * 2                      # bf16 x, double-buffered
        ob = 2 * bt * bb * Hp * out_bytes              # outputs, double-buffered
        zx = bt * bb * 4 * Hp * 4                      # f32 scratch
        wxw = Ip * 4 * Hp * 2                          # Buffered(1)
        whw = Hp * 4 * Hp * 2                          # Buffered(1)
        bias = 2 * 4 * Hp * 4
        h0c0 = 2 * 2 * bb * Hp * 4
        hct = 2 * 2 * bb * Hp * 4
        carry = 2 * bb * Hp * 4
        return xb + ob + zx + wxw + whw + bias + h0c0 + hct + carry

    while vmem_bytes(block_t, block_b) > budget:
        if block_t > 8:
            block_t = max(8, block_t // 2)
        elif block_b > 8:
            block_b = max(8, _round_up(block_b // 2, 8))
        elif block_t > 1:
            block_t = max(1, block_t // 2)
        else:
            break

    Tp = _round_up(T, block_t)
    Bp = _round_up(Bp, block_b)
    nb, nt = Bp // block_b, Tp // block_t
    vmem_limit = int(min(vmem_cap * 0.92,
                         max(vmem_bytes(block_t, block_b) * 1.5, 32 << 20)))

    # ---- padded / packed operands ------------------------------------------
    def pad_gates(w):                                  # pad last axis 4H -> 4Hp
        w4 = w.reshape(w.shape[:-1] + (4, H))
        w4 = jnp.pad(w4, [(0, 0)] * (w4.ndim - 1) + [(0, Hp - H)])
        return w4.reshape(w.shape[:-1] + (4 * Hp,))

    wx_p = jnp.pad(pad_gates(wx.astype(jnp.float32)),
                   ((0, Ip - I), (0, 0))).astype(jnp.bfloat16)     # (Ip, 4Hp)
    wh_p = jnp.pad(pad_gates(wh.astype(jnp.float32)),
                   ((0, Hp - H), (0, 0))).astype(jnp.bfloat16)     # (Hp, 4Hp)
    b_p = pad_gates(b.astype(jnp.float32).reshape(1, 4 * H))       # (1, 4Hp)
    x_p = jnp.pad(x_seq.astype(jnp.float32),
                  ((0, Tp - T), (0, Bp - B), (0, Ip - I))
                  ).astype(jnp.bfloat16)                           # (Tp, Bp, Ip)

    if state is None:
        h0 = jnp.zeros((B, H), jnp.float32)
        c0 = jnp.zeros((B, H), jnp.float32)
    else:
        h0 = state[0][0].astype(jnp.float32)
        c0 = state[1][0].astype(jnp.float32)
    h0_p = jnp.pad(h0, ((0, Bp - B), (0, Hp - H)))
    c0_p = jnp.pad(c0, ((0, Bp - B), (0, Hp - H)))

    kernel = functools.partial(_lstm_kernel, hidden_p=Hp, input_p=Ip,
                               block_t=block_t, block_b=block_b, seq_len=T)

    out_p, hT_p, cT_p = pl.pallas_call(
        kernel,
        out_shape=(
            jax.ShapeDtypeStruct((Tp, Bp, Hp), out_dtype),
            jax.ShapeDtypeStruct((Bp, Hp), jnp.float32),   # final h (f32)
            jax.ShapeDtypeStruct((Bp, Hp), jnp.float32),   # final c (f32)
        ),
        grid_spec=pltpu.PrefetchScalarGridSpec(
            num_scalar_prefetch=0,
            grid=(nb, nt),
            in_specs=[
                pl.BlockSpec((block_t, block_b, Ip),
                             lambda bb, tt: (tt, bb, 0)),              # x
                pl.BlockSpec((Ip, 4 * Hp), lambda bb, tt: (0, 0),
                             pipeline_mode=pl.Buffered(1)),            # Wx
                pl.BlockSpec((Hp, 4 * Hp), lambda bb, tt: (0, 0),
                             pipeline_mode=pl.Buffered(1)),            # Wh
                pl.BlockSpec((1, 4 * Hp), lambda bb, tt: (0, 0)),      # bias
                pl.BlockSpec((block_b, Hp), lambda bb, tt: (bb, 0)),   # h0
                pl.BlockSpec((block_b, Hp), lambda bb, tt: (bb, 0)),   # c0
            ],
            out_specs=(
                pl.BlockSpec((block_t, block_b, Hp),
                             lambda bb, tt: (tt, bb, 0)),              # outputs
                pl.BlockSpec((block_b, Hp), lambda bb, tt: (bb, 0)),   # final h
                pl.BlockSpec((block_b, Hp), lambda bb, tt: (bb, 0)),   # final c
            ),
            scratch_shapes=[
                pltpu.VMEM((block_b, Hp), jnp.float32),                # h carry
                pltpu.VMEM((block_b, Hp), jnp.float32),                # c carry
                pltpu.VMEM((block_t * block_b, 4 * Hp), jnp.float32),  # zx block
            ],
        ),
        compiler_params=pltpu.CompilerParams(
            # batch tiles independent (megacore-splittable on v7x);
            # time-block axis carries the recurrence -> sequential.
            dimension_semantics=("parallel", "arbitrary"),
            vmem_limit_bytes=vmem_limit),
    )(x_p, wx_p, wh_p, b_p, h0_p, c0_p)

    out_seq = out_p[:T, :B, :H]                         # (T, B, H)
    hT = hT_p[:B, :H]
    cT = cT_p[:B, :H]
    outputs = out_seq[:, None, :, :]                    # (T, 1, B, H)
    return outputs, (hT[None], cT[None])


def unrolled_lstm_reference(x, params, state=None, *, batch_first=True):
    """Pure-JAX f32 reference (lax.scan) mirroring the PyTorch eval forward."""
    wx, wh, b = params
    x_seq = jnp.transpose(x, (1, 0, 2)) if batch_first else x
    _, B, _ = x_seq.shape
    H = wh.shape[0]
    if state is None:
        h = jnp.zeros((B, H), jnp.float32)
        c = jnp.zeros((B, H), jnp.float32)
    else:
        h, c = state[0][0], state[1][0]

    def step(carry, xt):
        h, c = carry
        z = xt @ wx + h @ wh + b
        f = jax.nn.sigmoid(z[:, :H])
        i = jax.nn.sigmoid(z[:, H:2 * H])
        g = jnp.tanh(z[:, 2 * H:3 * H])
        o = jax.nn.sigmoid(z[:, 3 * H:])
        c_new = f * c + i * g
        h_new = o * jnp.tanh(c_new)
        return (h_new, c_new), h_new

    (hT, cT), outs = jax.lax.scan(step, (h, c), x_seq)
    return outs[:, None], (hT[None], cT[None])


# TODO(synk): training-mode VariationalDropout (random Bernoulli mask shared
# across timesteps) is not implemented; this is the eval-mode forward where
# dropout is the identity.


if __name__ == "__main__":
    B, T, I, H = 2, 8, 16, 32
    key = jax.random.PRNGKey(0)
    k_x, k_p = jax.random.split(key)

    x = jax.random.normal(k_x, (B, T, I), jnp.float32)   # batch_first input
    params = init_params(k_p, I, H)

    outputs, (h_fin, c_fin) = unrolled_lstm_forward(x, params, state=None,
                                                    batch_first=True)
    jax.block_until_ready((outputs, h_fin, c_fin))

    ref_out, (ref_h, ref_c) = unrolled_lstm_reference(x, params, state=None,
                                                      batch_first=True)
    assert outputs.shape == (T, 1, B, H)
    assert h_fin.shape == (1, B, H) and c_fin.shape == (1, B, H)
    # bf16 operands on the x@Wx and h@Wh matmuls => small deviation from the
    # f32 reference; loosen tolerances accordingly (expected error ~1e-3).
    assert jnp.allclose(outputs, ref_out, atol=2e-2, rtol=2e-2)
    assert jnp.allclose(h_fin, ref_h, atol=2e-2, rtol=2e-2)
    assert jnp.allclose(c_fin, ref_c, atol=2e-2, rtol=2e-2)

    print("KERNEL_OK")
</pallas_src>

<mosaic_0001>
module attributes {stable_mosaic.version = 11 : i64} {
  func.func @_lstm_kernel(%arg0: i32, %arg1: i32, %arg2: memref<8x8x128xbf16, #tpu.memory_space<vmem>>, %arg3: memref<128x512xbf16, #tpu.memory_space<vmem>>, %arg4: memref<128x512xbf16, #tpu.memory_space<vmem>>, %arg5: memref<1x512xf32, #tpu.memory_space<vmem>>, %arg6: memref<8x128xf32, #tpu.memory_space<vmem>>, %arg7: memref<8x128xf32, #tpu.memory_space<vmem>>, %arg8: memref<8x8x128xf32, #tpu.memory_space<vmem>>, %arg9: memref<8x128xf32, #tpu.memory_space<vmem>>, %arg10: memref<8x128xf32, #tpu.memory_space<vmem>>, %arg11: memref<8x128xf32, #tpu.memory_space<vmem>>, %arg12: memref<8x128xf32, #tpu.memory_space<vmem>>, %arg13: memref<64x512xf32, #tpu.memory_space<vmem>>) attributes {dimension_semantics = [#tpu.dimension_semantics<parallel>, #tpu.dimension_semantics<arbitrary>], iteration_bounds = array<i64: 1, 1>, scalar_prefetch = 0 : i64, scratch_operands = 3 : i64, tpu.core_type = #tpu.core_type<tc>, window_params = [{transform_indices = @transform_0, window_bounds = array<i64: 8, 8, 128>}, {pipeline_mode = #tpu.pipeline_mode<synchronous>, transform_indices = @transform_1, window_bounds = array<i64: 128, 512>}, {pipeline_mode = #tpu.pipeline_mode<synchronous>, transform_indices = @transform_2, window_bounds = array<i64: 128, 512>}, {pipeline_mode = #tpu.pipeline_mode<synchronous>, transform_indices = @transform_3, window_bounds = array<i64: 1, 512>}, {transform_indices = @transform_4, window_bounds = array<i64: 8, 128>}, {transform_indices = @transform_5, window_bounds = array<i64: 8, 128>}, {transform_indices = @transform_6, window_bounds = array<i64: 8, 8, 128>}, {transform_indices = @transform_7, window_bounds = array<i64: 8, 128>}, {transform_indices = @transform_8, window_bounds = array<i64: 8, 128>}]} {
    %c0_i32 = arith.constant 0 : i32
    %0 = arith.cmpi eq, %arg1, %c0_i32 : i32
    %1 = arith.extui %0 : i1 to i32
    %c0_i32_0 = arith.constant 0 : i32
    %2 = arith.cmpi ne, %1, %c0_i32_0 : i32
    scf.if %2 {
      %c0_134 = arith.constant 0 : index
      %c0_135 = arith.constant 0 : index
      %355 = vector.load %arg6[%c0_134, %c0_135] : memref<8x128xf32, #tpu.memory_space<vmem>>, vector<8x128xf32>
      %c0_136 = arith.constant 0 : index
      %c0_137 = arith.constant 0 : index
      %356 = vector.load %arg11[%c0_136, %c0_137] : memref<8x128xf32, #tpu.memory_space<vmem>>, vector<8x128xf32>
      tpu.vector_store %arg11[%c0_136, %c0_137], %355 {strides = array<i32>} : memref<8x128xf32, #tpu.memory_space<vmem>>, vector<8x128xf32>,
      %c0_138 = arith.constant 0 : index
      %c0_139 = arith.constant 0 : index
      %357 = vector.load %arg7[%c0_138, %c0_139] : memref<8x128xf32, #tpu.memory_space<vmem>>, vector<8x128xf32>
      %c0_140 = arith.constant 0 : index
      %c0_141 = arith.constant 0 : index
      %358 = vector.load %arg12[%c0_140, %c0_141] : memref<8x128xf32, #tpu.memory_space<vmem>>, vector<8x128xf32>
      tpu.vector_store %arg12[%c0_140, %c0_141], %357 {strides = array<i32>} : memref<8x128xf32, #tpu.memory_space<vmem>>, vector<8x128xf32>,
    } else {
    }
    %c0 = arith.constant 0 : index
    %c0_1 = arith.constant 0 : index
    %c0_2 = arith.constant 0 : index
    %3 = vector.load %arg2[%c0, %c0_1, %c0_2] : memref<8x8x128xbf16, #tpu.memory_space<vmem>>, vector<8x8x128xbf16>
    %4 = vector.shape_cast %3 : vector<8x8x128xbf16> to vector<64x128xbf16>
    %c0_3 = arith.constant 0 : index
    %c0_4 = arith.constant 0 : index
    %5 = vector.load %arg3[%c0_3, %c0_4] : memref<128x512xbf16, #tpu.memory_space<vmem>>, vector<128x512xbf16>
    %cst = arith.constant dense<0.000000e+00> : vector<64x512xf32>
    %6 = tpu.matmul %4, %5, %cst {dimension_numbers = #tpu.dot_dimension_numbers<[1], [0], [0], [1], [0, 0, 1, 1], [], []>} : vector<64x128xbf16>, vector<128x512xbf16>, vector<64x512xf32> -> vector<64x512xf32>
    %c0_5 = arith.constant 0 : index
    %c0_6 = arith.constant 0 : index
    %7 = vector.load %arg5[%c0_5, %c0_6] : memref<1x512xf32, #tpu.memory_space<vmem>>, vector<1x512xf32>
    %8 = vector.broadcast %7 : vector<1x512xf32> to vector<64x512xf32>
    %9 = arith.addf %6, %8 : vector<64x512xf32>
    %c0_7 = arith.constant 0 : index
    %c0_8 = arith.constant 0 : index
    %10 = vector.load %arg13[%c0_7, %c0_8] : memref<64x512xf32, #tpu.memory_space<vmem>>, vector<64x512xf32>
    tpu.vector_store %arg13[%c0_7, %c0_8], %9 {strides = array<i32>} : memref<64x512xf32, #tpu.memory_space<vmem>>, vector<64x512xf32>,
    %c0_9 = arith.constant 0 : index
    %c0_10 = arith.constant 0 : index
    %11 = vector.load %arg4[%c0_9, %c0_10] : memref<128x512xbf16, #tpu.memory_space<vmem>>, vector<128x512xbf16>
    %c0_11 = arith.constant 0 : index
    %c0_12 = arith.constant 0 : index
    %12 = vector.load %arg11[%c0_11, %c0_12] : memref<8x128xf32, #tpu.memory_space<vmem>>, vector<8x128xf32>
    %c0_13 = arith.constant 0 : index
    %c0_14 = arith.constant 0 : index
    %13 = vector.load %arg12[%c0_13, %c0_14] : memref<8x128xf32, #tpu.memory_space<vmem>>, vector<8x128xf32>
    %c0_i32_15 = arith.constant 0 : i32
    %c8_i32 = arith.constant 8 : i32
    %14 = arith.muli %c0_i32_15, %c8_i32 : i32
    %15 = tpu.assume_multiple %14, 8 : i32
    %16 = arith.index_cast %15 : i32 to index
    %c0_16 = arith.constant 0 : index
    %17 = vector.load %arg13[%16, %c0_16] : memref<64x512xf32, #tpu.memory_space<vmem>>, vector<8x512xf32>
    %18 = arith.truncf %12 : vector<8x128xf32> to vector<8x128xbf16>
    %cst_17 = arith.constant dense<0.000000e+00> : vector<8x512xf32>
    %19 = tpu.matmul %18, %11, %cst_17 {dimension_numbers = #tpu.dot_dimension_numbers<[1], [0], [0], [1], [0, 0, 1, 1], [], []>} : vector<8x128xbf16>, vector<128x512xbf16>, vector<8x512xf32> -> vector<8x512xf32>
    %20 = arith.addf %17, %19 : vector<8x512xf32>
    %21 = vector.extract_strided_slice %20 {offsets = [0, 0], sizes = [8, 128], strides = [1, 1]} : vector<8x512xf32> to vector<8x128xf32>
    %cst_18 = arith.constant 5.000000e-01 : f32
    %22 = vector.broadcast %cst_18 : f32 to vector<8x128xf32>
    %23 = arith.mulf %22, %21 : vector<8x128xf32>
    %24 = math.tanh %23 : vector<8x128xf32>
    %cst_19 = arith.constant 5.000000e-01 : f32
    %25 = vector.broadcast %cst_19 : f32 to vector<8x128xf32>
    %26 = arith.mulf %25, %24 : vector<8x128xf32>
    %cst_20 = arith.constant 5.000000e-01 : f32
    %27 = vector.broadcast %cst_20 : f32 to vector<8x128xf32>
    %28 = arith.addf %26, %27 : vector<8x128xf32>
    %29 = vector.extract_strided_slice %20 {offsets = [0, 128], sizes = [8, 128], strides = [1, 1]} : vector<8x512xf32> to vector<8x128xf32>
    %cst_21 = arith.constant 5.000000e-01 : f32
    %30 = vector.broadcast %cst_21 : f32 to vector<8x128xf32>
    %31 = arith.mulf %30, %29 : vector<8x128xf32>
    %32 = math.tanh %31 : vector<8x128xf32>
    %cst_22 = arith.constant 5.000000e-01 : f32
    %33 = vector.broadcast %cst_22 : f32 to vector<8x128xf32>
    %34 = arith.mulf %33, %32 : vector<8x128xf32>
    %cst_23 = arith.constant 5.000000e-01 : f32
    %35 = vector.broadcast %cst_23 : f32 to vector<8x128xf32>
    %36 = arith.addf %34, %35 : vector<8x128xf32>
    %37 = vector.extract_strided_slice %20 {offsets = [0, 256], sizes = [8, 128], strides = [1, 1]} : vector<8x512xf32> to vector<8x128xf32>
    %38 = math.tanh %37 : vector<8x128xf32>
    %39 = vector.extract_strided_slice %20 {offsets = [0, 384], sizes = [8, 128], strides = [1, 1]} : vector<8x512xf32> to vector<8x128xf32>
    %cst_24 = arith.constant 5.000000e-01 : f32
    %40 = vector.broadcast %cst_24 : f32 to vector<8x128xf32>
    %41 = arith.mulf %40, %39 : vector<8x128xf32>
    %42 = math.tanh %41 : vector<8x128xf32>
    %cst_25 = arith.constant 5.000000e-01 : f32
    %43 = vector.broadcast %cst_25 : f32 to vector<8x128xf32>
    %44 = arith.mulf %43, %42 : vector<8x128xf32>
    %cst_26 = arith.constant 5.000000e-01 : f32
    %45 = vector.broadcast %cst_26 : f32 to vector<8x128xf32>
    %46 = arith.addf %44, %45 : vector<8x128xf32>
    %47 = arith.mulf %28, %13 : vector<8x128xf32>
    %48 = arith.mulf %36, %38 : vector<8x128xf32>
    %49 = arith.addf %47, %48 : vector<8x128xf32>
    %50 = math.tanh %49 : vector<8x128xf32>
    %51 = arith.mulf %46, %50 : vector<8x128xf32>
    %52 = arith.index_cast %c0_i32_15 : i32 to index
    %c0_27 = arith.constant 0 : index
    %c0_28 = arith.constant 0 : index
    %53 = vector.load %arg8[%52, %c0_27, %c0_28] : memref<8x8x128xf32, #tpu.memory_space<vmem>>, vector<1x8x128xf32>
    %54 = vector.shape_cast %53 : vector<1x8x128xf32> to vector<8x128xf32>
    %55 = vector.shape_cast %51 : vector<8x128xf32> to vector<1x8x128xf32>
    tpu.vector_store %arg8[%52, %c0_27, %c0_28], %55 {strides = array<i32>} : memref<8x8x128xf32, #tpu.memory_space<vmem>>, vector<1x8x128xf32>,
    %c1_i32 = arith.constant 1 : i32
    %c8_i32_29 = arith.constant 8 : i32
    %56 = arith.muli %c1_i32, %c8_i32_29 : i32
    %57 = tpu.assume_multiple %56, 8 : i32
    %58 = arith.index_cast %57 : i32 to index
    %c0_30 = arith.constant 0 : index
    %59 = vector.load %arg13[%58, %c0_30] : memref<64x512xf32, #tpu.memory_space<vmem>>, vector<8x512xf32>
    %60 = arith.truncf %51 : vector<8x128xf32> to vector<8x128xbf16>
    %cst_31 = arith.constant dense<0.000000e+00> : vector<8x512xf32>
    %61 = tpu.matmul %60, %11, %cst_31 {dimension_numbers = #tpu.dot_dimension_numbers<[1], [0], [0], [1], [0, 0, 1, 1], [], []>} : vector<8x128xbf16>, vector<128x512xbf16>, vector<8x512xf32> -> vector<8x512xf32>
    %62 = arith.addf %59, %61 : vector<8x512xf32>
    %63 = vector.extract_strided_slice %62 {offsets = [0, 0], sizes = [8, 128], strides = [1, 1]} : vector<8x512xf32> to vector<8x128xf32>
    %cst_32 = arith.constant 5.000000e-01 : f32
    %64 = vector.broadcast %cst_32 : f32 to vector<8x128xf32>
    %65 = arith.mulf %64, %63 : vector<8x128xf32>
    %66 = math.tanh %65 : vector<8x128xf32>
    %cst_33 = arith.constant 5.000000e-01 : f32
    %67 = vector.broadcast %cst_33 : f32 to vector<8x128xf32>
    %68 = arith.mulf %67, %66 : vector<8x128xf32>
    %cst_34 = arith.constant 5.000000e-01 : f32
    %69 = vector.broadcast %cst_34 : f32 to vector<8x128xf32>
    %70 = arith.addf %68, %69 : vector<8x128xf32>
    %71 = vector.extract_strided_slice %62 {offsets = [0, 128], sizes = [8, 128], strides = [1, 1]} : vector<8x512xf32> to vector<8x128xf32>
    %cst_35 = arith.constant 5.000000e-01 : f32
    %72 = vector.broadcast %cst_35 : f32 to vector<8x128xf32>
    %73 = arith.mulf %72, %71 : vector<8x128xf32>
    %74 = math.tanh %73 : vector<8x128xf32>
    %cst_36 = arith.constant 5.000000e-01 : f32
    %75 = vector.broadcast %cst_36 : f32 to vector<8x128xf32>
    %76 = arith.mulf %75, %74 : vector<8x128xf32>
    %cst_37 = arith.constant 5.000000e-01 : f32
    %77 = vector.broadcast %cst_37 : f32 to vector<8x128xf32>
    %78 = arith.addf %76, %77 : vector<8x128xf32>
    %79 = vector.extract_strided_slice %62 {offsets = [0, 256], sizes = [8, 128], strides = [1, 1]} : vector<8x512xf32> to vector<8x128xf32>
    %80 = math.tanh %79 : vector<8x128xf32>
    %81 = vector.extract_strided_slice %62 {offsets = [0, 384], sizes = [8, 128], strides = [1, 1]} : vector<8x512xf32> to vector<8x128xf32>
    %cst_38 = arith.constant 5.000000e-01 : f32
    %82 = vector.broadcast %cst_38 : f32 to vector<8x128xf32>
    %83 = arith.mulf %82, %81 : vector<8x128xf32>
    %84 = math.tanh %83 : vector<8x128xf32>
    %cst_39 = arith.constant 5.000000e-01 : f32
    %85 = vector.broadcast %cst_39 : f32 to vector<8x128xf32>
    %86 = arith.mulf %85, %84 : vector<8x128xf32>
    %cst_40 = arith.constant 5.000000e-01 : f32
    %87 = vector.broadcast %cst_40 : f32 to vector<8x128xf32>
    %88 = arith.addf %86, %87 : vector<8x128xf32>
    %89 = arith.mulf %70, %49 : vector<8x128xf32>
    %90 = arith.mulf %78, %80 : vector<8x128xf32>
    %91 = arith.addf %89, %90 : vector<8x128xf32>
    %92 = math.tanh %91 : vector<8x128xf32>
    %93 = arith.mulf %88, %92 : vector<8x128xf32>
    %94 = arith.index_cast %c1_i32 : i32 to index
    %c0_41 = arith.constant 0 : index
    %c0_42 = arith.constant 0 : index
    %95 = vector.load %arg8[%94, %c0_41, %c0_42] : memref<8x8x128xf32, #tpu.memory_space<vmem>>, vector<1x8x128xf32>
    %96 = vector.shape_cast %95 : vector<1x8x128xf32> to vector<8x128xf32>
    %97 = vector.shape_cast %93 : vector<8x128xf32> to vector<1x8x128xf32>
    tpu.vector_store %arg8[%94, %c0_41, %c0_42], %97 {strides = array<i32>} : memref<8x8x128xf32, #tpu.memory_space<vmem>>, vector<1x8x128xf32>,
    %c2_i32 = arith.constant 2 : i32
    %c8_i32_43 = arith.constant 8 : i32
    %98 = arith.muli %c2_i32, %c8_i32_43 : i32
    %99 = tpu.assume_multiple %98, 8 : i32
    %100 = arith.index_cast %99 : i32 to index
    %c0_44 = arith.constant 0 : index
    %101 = vector.load %arg13[%100, %c0_44] : memref<64x512xf32, #tpu.memory_space<vmem>>, vector<8x512xf32>
    %102 = arith.truncf %93 : vector<8x128xf32> to vector<8x128xbf16>
    %cst_45 = arith.constant dense<0.000000e+00> : vector<8x512xf32>
    %103 = tpu.matmul %102, %11, %cst_45 {dimension_numbers = #tpu.dot_dimension_numbers<[1], [0], [0], [1], [0, 0, 1, 1], [], []>} : vector<8x128xbf16>, vector<128x512xbf16>, vector<8x512xf32> -> vector<8x512xf32>
    %104 = arith.addf %101, %103 : vector<8x512xf32>
    %105 = vector.extract_strided_slice %104 {offsets = [0, 0], sizes = [8, 128], strides = [1, 1]} : vector<8x512xf32> to vector<8x128xf32>
    %cst_46 = arith.constant 5.000000e-01 : f32
    %106 = vector.broadcast %cst_46 : f32 to vector<8x128xf32>
    %107 = arith.mulf %106, %105 : vector<8x128xf32>
    %108 = math.tanh %107 : vector<8x128xf32>
    %cst_47 = arith.constant 5.000000e-01 : f32
    %109 = vector.broadcast %cst_47 : f32 to vector<8x128xf32>
    %110 = arith.mulf %109, %108 : vector<8x128xf32>
    %cst_48 = arith.constant 5.000000e-01 : f32
    %111 = vector.broadcast %cst_48 : f32 to vector<8x128xf32>
    %112 = arith.addf %110, %111 : vector<8x128xf32>
    %113 = vector.extract_strided_slice %104 {offsets = [0, 128], sizes = [8, 128], strides = [1, 1]} : vector<8x512xf32> to vector<8x128xf32>
    %cst_49 = arith.constant 5.000000e-01 : f32
    %114 = vector.broadcast %cst_49 : f32 to vector<8x128xf32>
    %115 = arith.mulf %114, %113 : vector<8x128xf32>
    %116 = math.tanh %115 : vector<8x128xf32>
    %cst_50 = arith.constant 5.000000e-01 : f32
    %117 = vector.broadcast %cst_50 : f32 to vector<8x128xf32>
    %118 = arith.mulf %117, %116 : vector<8x128xf32>
    %cst_51 = arith.constant 5.000000e-01 : f32
    %119 = vector.broadcast %cst_51 : f32 to vector<8x128xf32>
    %120 = arith.addf %118, %119 : vector<8x128xf32>
    %121 = vector.extract_strided_slice %104 {offsets = [0, 256], sizes = [8, 128], strides = [1, 1]} : vector<8x512xf32> to vector<8x128xf32>
    %122 = math.tanh %121 : vector<8x128xf32>
    %123 = vector.extract_strided_slice %104 {offsets = [0, 384], sizes = [8, 128], strides = [1, 1]} : vector<8x512xf32> to vector<8x128xf32>
    %cst_52 = arith.constant 5.000000e-01 : f32
    %124 = vector.broadcast %cst_52 : f32 to vector<8x128xf32>
    %125 = arith.mulf %124, %123 : vector<8x128xf32>
    %126 = math.tanh %125 : vector<8x128xf32>
    %cst_53 = arith.constant 5.000000e-01 : f32
    %127 = vector.broadcast %cst_53 : f32 to vector<8x128xf32>
    %128 = arith.mulf %127, %126 : vector<8x128xf32>
    %cst_54 = arith.constant 5.000000e-01 : f32
    %129 = vector.broadcast %cst_54 : f32 to vector<8x128xf32>
    %130 = arith.addf %128, %129 : vector<8x128xf32>
    %131 = arith.mulf %112, %91 : vector<8x128xf32>
    %132 = arith.mulf %120, %122 : vector<8x128xf32>
    %133 = arith.addf %131, %132 : vector<8x128xf32>
    %134 = math.tanh %133 : vector<8x128xf32>
    %135 = arith.mulf %130, %134 : vector<8x128xf32>
    %136 = arith.index_cast %c2_i32 : i32 to index
    %c0_55 = arith.constant 0 : index
    %c0_56 = arith.constant 0 : index
    %137 = vector.load %arg8[%136, %c0_55, %c0_56] : memref<8x8x128xf32, #tpu.memory_space<vmem>>, vector<1x8x128xf32>
    %138 = vector.shape_cast %137 : vector<1x8x128xf32> to vector<8x128xf32>
    %139 = vector.shape_cast %135 : vector<8x128xf32> to vector<1x8x128xf32>
    tpu.vector_store %arg8[%136, %c0_55, %c0_56], %139 {strides = array<i32>} : memref<8x8x128xf32, #tpu.memory_space<vmem>>, vector<1x8x128xf32>,
    %c3_i32 = arith.constant 3 : i32
    %c8_i32_57 = arith.constant 8 : i32
    %140 = arith.muli %c3_i32, %c8_i32_57 : i32
    %141 = tpu.assume_multiple %140, 8 : i32
    %142 = arith.index_cast %141 : i32 to index
    %c0_58 = arith.constant 0 : index
    %143 = vector.load %arg13[%142, %c0_58] : memref<64x512xf32, #tpu.memory_space<vmem>>, vector<8x512xf32>
    %144 = arith.truncf %135 : vector<8x128xf32> to vector<8x128xbf16>
    %cst_59 = arith.constant dense<0.000000e+00> : vector<8x512xf32>
    %145 = tpu.matmul %144, %11, %cst_59 {dimension_numbers = #tpu.dot_dimension_numbers<[1], [0], [0], [1], [0, 0, 1, 1], [], []>} : vector<8x128xbf16>, vector<128x512xbf16>, vector<8x512xf32> -> vector<8x512xf32>
    %146 = arith.addf %143, %145 : vector<8x512xf32>
    %147 = vector.extract_strided_slice %146 {offsets = [0, 0], sizes = [8, 128], strides = [1, 1]} : vector<8x512xf32> to vector<8x128xf32>
    %cst_60 = arith.constant 5.000000e-01 : f32
    %148 = vector.broadcast %cst_60 : f32 to vector<8x128xf32>
    %149 = arith.mulf %148, %147 : vector<8x128xf32>
    %150 = math.tanh %149 : vector<8x128xf32>
    %cst_61 = arith.constant 5.000000e-01 : f32
    %151 = vector.broadcast %cst_61 : f32 to vector<8x128xf32>
    %152 = arith.mulf %151, %150 : vector<8x128xf32>
    %cst_62 = arith.constant 5.000000e-01 : f32
    %153 = vector.broadcast %cst_62 : f32 to vector<8x128xf32>
    %154 = arith.addf %152, %153 : vector<8x128xf32>
    %155 = vector.extract_strided_slice %146 {offsets = [0, 128], sizes = [8, 128], strides = [1, 1]} : vector<8x512xf32> to vector<8x128xf32>
    %cst_63 = arith.constant 5.000000e-01 : f32
    %156 = vector.broadcast %cst_63 : f32 to vector<8x128xf32>
    %157 = arith.mulf %156, %155 : vector<8x128xf32>
    %158 = math.tanh %157 : vector<8x128xf32>
    %cst_64 = arith.constant 5.000000e-01 : f32
    %159 = vector.broadcast %cst_64 : f32 to vector<8x128xf32>
    %160 = arith.mulf %159, %158 : vector<8x128xf32>
    %cst_65 = arith.constant 5.000000e-01 : f32
    %161 = vector.broadcast %cst_65 : f32 to vector<8x128xf32>
    %162 = arith.addf %160, %161 : vector<8x128xf32>
    %163 = vector.extract_strided_slice %146 {offsets = [0, 256], sizes = [8, 128], strides = [1, 1]} : vector<8x512xf32> to vector<8x128xf32>
    %164 = math.tanh %163 : vector<8x128xf32>
    %165 = vector.extract_strided_slice %146 {offsets = [0, 384], sizes = [8, 128], strides = [1, 1]} : vector<8x512xf32> to vector<8x128xf32>
    %cst_66 = arith.constant 5.000000e-01 : f32
    %166 = vector.broadcast %cst_66 : f32 to vector<8x128xf32>
    %167 = arith.mulf %166, %165 : vector<8x128xf32>
    %168 = math.tanh %167 : vector<8x128xf32>
    %cst_67 = arith.constant 5.000000e-01 : f32
    %169 = vector.broadcast %cst_67 : f32 to vector<8x128xf32>
    %170 = arith.mulf %169, %168 : vector<8x128xf32>
    %cst_68 = arith.constant 5.000000e-01 : f32
    %171 = vector.broadcast %cst_68 : f32 to vector<8x128xf32>
    %172 = arith.addf %170, %171 : vector<8x128xf32>
    %173 = arith.mulf %154, %133 : vector<8x128xf32>
    %174 = arith.mulf %162, %164 : vector<8x128xf32>
    %175 = arith.addf %173, %174 : vector<8x128xf32>
    %176 = math.tanh %175 : vector<8x128xf32>
    %177 = arith.mulf %172, %176 : vector<8x128xf32>
    %178 = arith.index_cast %c3_i32 : i32 to index
    %c0_69 = arith.constant 0 : index
    %c0_70 = arith.constant 0 : index
    %179 = vector.load %arg8[%178, %c0_69, %c0_70] : memref<8x8x128xf32, #tpu.memory_space<vmem>>, vector<1x8x128xf32>
    %180 = vector.shape_cast %179 : vector<1x8x128xf32> to vector<8x128xf32>
    %181 = vector.shape_cast %177 : vector<8x128xf32> to vector<1x8x128xf32>
    tpu.vector_store %arg8[%178, %c0_69, %c0_70], %181 {strides = array<i32>} : memref<8x8x128xf32, #tpu.memory_space<vmem>>, vector<1x8x128xf32>,
    %c4_i32 = arith.constant 4 : i32
    %c8_i32_71 = arith.constant 8 : i32
    %182 = arith.muli %c4_i32, %c8_i32_71 : i32
    %183 = tpu.assume_multiple %182, 8 : i32
    %184 = arith.index_cast %183 : i32 to index
    %c0_72 = arith.constant 0 : index
    %185 = vector.load %arg13[%184, %c0_72] : memref<64x512xf32, #tpu.memory_space<vmem>>, vector<8x512xf32>
    %186 = arith.truncf %177 : vector<8x128xf32> to vector<8x128xbf16>
    %cst_73 = arith.constant dense<0.000000e+00> : vector<8x512xf32>
    %187 = tpu.matmul %186, %11, %cst_73 {dimension_numbers = #tpu.dot_dimension_numbers<[1], [0], [0], [1], [0, 0, 1, 1], [], []>} : vector<8x128xbf16>, vector<128x512xbf16>, vector<8x512xf32> -> vector<8x512xf32>
    %188 = arith.addf %185, %187 : vector<8x512xf32>
    %189 = vector.extract_strided_slice %188 {offsets = [0, 0], sizes = [8, 128], strides = [1, 1]} : vector<8x512xf32> to vector<8x128xf32>
    %cst_74 = arith.constant 5.000000e-01 : f32
    %190 = vector.broadcast %cst_74 : f32 to vector<8x128xf32>
    %191 = arith.mulf %190, %189 : vector<8x128xf32>
    %192 = math.tanh %191 : vector<8x128xf32>
    %cst_75 = arith.constant 5.000000e-01 : f32
    %193 = vector.broadcast %cst_75 : f32 to vector<8x128xf32>
    %194 = arith.mulf %193, %192 : vector<8x128xf32>
    %cst_76 = arith.constant 5.000000e-01 : f32
    %195 = vector.broadcast %cst_76 : f32 to vector<8x128xf32>
    %196 = arith.addf %194, %195 : vector<8x128xf32>
    %197 = vector.extract_strided_slice %188 {offsets = [0, 128], sizes = [8, 128], strides = [1, 1]} : vector<8x512xf32> to vector<8x128xf32>
    %cst_77 = arith.constant 5.000000e-01 : f32
    %198 = vector.broadcast %cst_77 : f32 to vector<8x128xf32>
    %199 = arith.mulf %198, %197 : vector<8x128xf32>
    %200 = math.tanh %199 : vector<8x128xf32>
    %cst_78 = arith.constant 5.000000e-01 : f32
    %201 = vector.broadcast %cst_78 : f32 to vector<8x128xf32>
    %202 = arith.mulf %201, %200 : vector<8x128xf32>
    %cst_79 = arith.constant 5.000000e-01 : f32
    %203 = vector.broadcast %cst_79 : f32 to vector<8x128xf32>
    %204 = arith.addf %202, %203 : vector<8x128xf32>
    %205 = vector.extract_strided_slice %188 {offsets = [0, 256], sizes = [8, 128], strides = [1, 1]} : vector<8x512xf32> to vector<8x128xf32>
    %206 = math.tanh %205 : vector<8x128xf32>
    %207 = vector.extract_strided_slice %188 {offsets = [0, 384], sizes = [8, 128], strides = [1, 1]} : vector<8x512xf32> to vector<8x128xf32>
    %cst_80 = arith.constant 5.000000e-01 : f32
    %208 = vector.broadcast %cst_80 : f32 to vector<8x128xf32>
    %209 = arith.mulf %208, %207 : vector<8x128xf32>
    %210 = math.tanh %209 : vector<8x128xf32>
    %cst_81 = arith.constant 5.000000e-01 : f32
    %211 = vector.broadcast %cst_81 : f32 to vector<8x128xf32>
    %212 = arith.mulf %211, %210 : vector<8x128xf32>
    %cst_82 = arith.constant 5.000000e-01 : f32
    %213 = vector.broadcast %cst_82 : f32 to vector<8x128xf32>
    %214 = arith.addf %212, %213 : vector<8x128xf32>
    %215 = arith.mulf %196, %175 : vector<8x128xf32>
    %216 = arith.mulf %204, %206 : vector<8x128xf32>
    %217 = arith.addf %215, %216 : vector<8x128xf32>
    %218 = math.tanh %217 : vector<8x128xf32>
    %219 = arith.mulf %214, %218 : vector<8x128xf32>
    %220 = arith.index_cast %c4_i32 : i32 to index
    %c0_83 = arith.constant 0 : index
    %c0_84 = arith.constant 0 : index
    %221 = vector.load %arg8[%220, %c0_83, %c0_84] : memref<8x8x128xf32, #tpu.memory_space<vmem>>, vector<1x8x128xf32>
    %222 = vector.shape_cast %221 : vector<1x8x128xf32> to vector<8x128xf32>
    %223 = vector.shape_cast %219 : vector<8x128xf32> to vector<1x8x128xf32>
    tpu.vector_store %arg8[%220, %c0_83, %c0_84], %223 {strides = array<i32>} : memref<8x8x128xf32, #tpu.memory_space<vmem>>, vector<1x8x128xf32>,
    %c5_i32 = arith.constant 5 : i32
    %c8_i32_85 = arith.constant 8 : i32
    %224 = arith.muli %c5_i32, %c8_i32_85 : i32
    %225 = tpu.assume_multiple %224, 8 : i32
    %226 = arith.index_cast %225 : i32 to index
    %c0_86 = arith.constant 0 : index
    %227 = vector.load %arg13[%226, %c0_86] : memref<64x512xf32, #tpu.memory_space<vmem>>, vector<8x512xf32>
    %228 = arith.truncf %219 : vector<8x128xf32> to vector<8x128xbf16>
    %cst_87 = arith.constant dense<0.000000e+00> : vector<8x512xf32>
    %229 = tpu.matmul %228, %11, %cst_87 {dimension_numbers = #tpu.dot_dimension_numbers<[1], [0], [0], [1], [0, 0, 1, 1], [], []>} : vector<8x128xbf16>, vector<128x512xbf16>, vector<8x512xf32> -> vector<8x512xf32>
    %230 = arith.addf %227, %229 : vector<8x512xf32>
    %231 = vector.extract_strided_slice %230 {offsets = [0, 0], sizes = [8, 128], strides = [1, 1]} : vector<8x512xf32> to vector<8x128xf32>
    %cst_88 = arith.constant 5.000000e-01 : f32
    %232 = vector.broadcast %cst_88 : f32 to vector<8x128xf32>
    %233 = arith.mulf %232, %231 : vector<8x128xf32>
    %234 = math.tanh %233 : vector<8x128xf32>
    %cst_89 = arith.constant 5.000000e-01 : f32
    %235 = vector.broadcast %cst_89 : f32 to vector<8x128xf32>
    %236 = arith.mulf %235, %234 : vector<8x128xf32>
    %cst_90 = arith.constant 5.000000e-01 : f32
    %237 = vector.broadcast %cst_90 : f32 to vector<8x128xf32>
    %238 = arith.addf %236, %237 : vector<8x128xf32>
    %239 = vector.extract_strided_slice %230 {offsets = [0, 128], sizes = [8, 128], strides = [1, 1]} : vector<8x512xf32> to vector<8x128xf32>
    %cst_91 = arith.constant 5.000000e-01 : f32
    %240 = vector.broadcast %cst_91 : f32 to vector<8x128xf32>
    %241 = arith.mulf %240, %239 : vector<8x128xf32>
    %242 = math.tanh %241 : vector<8x128xf32>
    %cst_92 = arith.constant 5.000000e-01 : f32
    %243 = vector.broadcast %cst_92 : f32 to vector<8x128xf32>
    %244 = arith.mulf %243, %242 : vector<8x128xf32>
    %cst_93 = arith.constant 5.000000e-01 : f32
    %245 = vector.broadcast %cst_93 : f32 to vector<8x128xf32>
    %246 = arith.addf %244, %245 : vector<8x128xf32>
    %247 = vector.extract_strided_slice %230 {offsets = [0, 256], sizes = [8, 128], strides = [1, 1]} : vector<8x512xf32> to vector<8x128xf32>
    %248 = math.tanh %247 : vector<8x128xf32>
    %249 = vector.extract_strided_slice %230 {offsets = [0, 384], sizes = [8, 128], strides = [1, 1]} : vector<8x512xf32> to vector<8x128xf32>
    %cst_94 = arith.constant 5.000000e-01 : f32
    %250 = vector.broadcast %cst_94 : f32 to vector<8x128xf32>
    %251 = arith.mulf %250, %249 : vector<8x128xf32>
    %252 = math.tanh %251 : vector<8x128xf32>
    %cst_95 = arith.constant 5.000000e-01 : f32
    %253 = vector.broadcast %cst_95 : f32 to vector<8x128xf32>
    %254 = arith.mulf %253, %252 : vector<8x128xf32>
    %cst_96 = arith.constant 5.000000e-01 : f32
    %255 = vector.broadcast %cst_96 : f32 to vector<8x128xf32>
    %256 = arith.addf %254, %255 : vector<8x128xf32>
    %257 = arith.mulf %238, %217 : vector<8x128xf32>
    %258 = arith.mulf %246, %248 : vector<8x128xf32>
    %259 = arith.addf %257, %258 : vector<8x128xf32>
    %260 = math.tanh %259 : vector<8x128xf32>
    %261 = arith.mulf %256, %260 : vector<8x128xf32>
    %262 = arith.index_cast %c5_i32 : i32 to index
    %c0_97 = arith.constant 0 : index
    %c0_98 = arith.constant 0 : index
    %263 = vector.load %arg8[%262, %c0_97, %c0_98] : memref<8x8x128xf32, #tpu.memory_space<vmem>>, vector<1x8x128xf32>
    %264 = vector.shape_cast %263 : vector<1x8x128xf32> to vector<8x128xf32>
    %265 = vector.shape_cast %261 : vector<8x128xf32> to vector<1x8x128xf32>
    tpu.vector_store %arg8[%262, %c0_97, %c0_98], %265 {strides = array<i32>} : memref<8x8x128xf32, #tpu.memory_space<vmem>>, vector<1x8x128xf32>,
    %c6_i32 = arith.constant 6 : i32
    %c8_i32_99 = arith.constant 8 : i32
    %266 = arith.muli %c6_i32, %c8_i32_99 : i32
    %267 = tpu.assume_multiple %266, 8 : i32
    %268 = arith.index_cast %267 : i32 to index
    %c0_100 = arith.constant 0 : index
    %269 = vector.load %arg13[%268, %c0_100] : memref<64x512xf32, #tpu.memory_space<vmem>>, vector<8x512xf32>
    %270 = arith.truncf %261 : vector<8x128xf32> to vector<8x128xbf16>
    %cst_101 = arith.constant dense<0.000000e+00> : vector<8x512xf32>
    %271 = tpu.matmul %270, %11, %cst_101 {dimension_numbers = #tpu.dot_dimension_numbers<[1], [0], [0], [1], [0, 0, 1, 1], [], []>} : vector<8x128xbf16>, vector<128x512xbf16>, vector<8x512xf32> -> vector<8x512xf32>
    %272 = arith.addf %269, %271 : vector<8x512xf32>
    %273 = vector.extract_strided_slice %272 {offsets = [0, 0], sizes = [8, 128], strides = [1, 1]} : vector<8x512xf32> to vector<8x128xf32>
    %cst_102 = arith.constant 5.000000e-01 : f32
    %274 = vector.broadcast %cst_102 : f32 to vector<8x128xf32>
    %275 = arith.mulf %274, %273 : vector<8x128xf32>
    %276 = math.tanh %275 : vector<8x128xf32>
    %cst_103 = arith.constant 5.000000e-01 : f32
    %277 = vector.broadcast %cst_103 : f32 to vector<8x128xf32>
    %278 = arith.mulf %277, %276 : vector<8x128xf32>
    %cst_104 = arith.constant 5.000000e-01 : f32
    %279 = vector.broadcast %cst_104 : f32 to vector<8x128xf32>
    %280 = arith.addf %278, %279 : vector<8x128xf32>
    %281 = vector.extract_strided_slice %272 {offsets = [0, 128], sizes = [8, 128], strides = [1, 1]} : vector<8x512xf32> to vector<8x128xf32>
    %cst_105 = arith.constant 5.000000e-01 : f32
    %282 = vector.broadcast %cst_105 : f32 to vector<8x128xf32>
    %283 = arith.mulf %282, %281 : vector<8x128xf32>
    %284 = math.tanh %283 : vector<8x128xf32>
    %cst_106 = arith.constant 5.000000e-01 : f32
    %285 = vector.broadcast %cst_106 : f32 to vector<8x128xf32>
    %286 = arith.mulf %285, %284 : vector<8x128xf32>
    %cst_107 = arith.constant 5.000000e-01 : f32
    %287 = vector.broadcast %cst_107 : f32 to vector<8x128xf32>
    %288 = arith.addf %286, %287 : vector<8x128xf32>
    %289 = vector.extract_strided_slice %272 {offsets = [0, 256], sizes = [8, 128], strides = [1, 1]} : vector<8x512xf32> to vector<8x128xf32>
    %290 = math.tanh %289 : vector<8x128xf32>
    %291 = vector.extract_strided_slice %272 {offsets = [0, 384], sizes = [8, 128], strides = [1, 1]} : vector<8x512xf32> to vector<8x128xf32>
    %cst_108 = arith.constant 5.000000e-01 : f32
    %292 = vector.broadcast %cst_108 : f32 to vector<8x128xf32>
    %293 = arith.mulf %292, %291 : vector<8x128xf32>
    %294 = math.tanh %293 : vector<8x128xf32>
    %cst_109 = arith.constant 5.000000e-01 : f32
    %295 = vector.broadcast %cst_109 : f32 to vector<8x128xf32>
    %296 = arith.mulf %295, %294 : vector<8x128xf32>
    %cst_110 = arith.constant 5.000000e-01 : f32
    %297 = vector.broadcast %cst_110 : f32 to vector<8x128xf32>
    %298 = arith.addf %296, %297 : vector<8x128xf32>
    %299 = arith.mulf %280, %259 : vector<8x128xf32>
    %300 = arith.mulf %288, %290 : vector<8x128xf32>
    %301 = arith.addf %299, %300 : vector<8x128xf32>
    %302 = math.tanh %301 : vector<8x128xf32>
    %303 = arith.mulf %298, %302 : vector<8x128xf32>
    %304 = arith.index_cast %c6_i32 : i32 to index
    %c0_111 = arith.constant 0 : index
    %c0_112 = arith.constant 0 : index
    %305 = vector.load %arg8[%304, %c0_111, %c0_112] : memref<8x8x128xf32, #tpu.memory_space<vmem>>, vector<1x8x128xf32>
    %306 = vector.shape_cast %305 : vector<1x8x128xf32> to vector<8x128xf32>
    %307 = vector.shape_cast %303 : vector<8x128xf32> to vector<1x8x128xf32>
    tpu.vector_store %arg8[%304, %c0_111, %c0_112], %307 {strides = array<i32>} : memref<8x8x128xf32, #tpu.memory_space<vmem>>, vector<1x8x128xf32>,
    %c7_i32 = arith.constant 7 : i32
    %c8_i32_113 = arith.constant 8 : i32
    %308 = arith.muli %c7_i32, %c8_i32_113 : i32
    %309 = tpu.assume_multiple %308, 8 : i32
    %310 = arith.index_cast %309 : i32 to index
    %c0_114 = arith.constant 0 : index
    %311 = vector.load %arg13[%310, %c0_114] : memref<64x512xf32, #tpu.memory_space<vmem>>, vector<8x512xf32>
    %312 = arith.truncf %303 : vector<8x128xf32> to vector<8x128xbf16>
    %cst_115 = arith.constant dense<0.000000e+00> : vector<8x512xf32>
    %313 = tpu.matmul %312, %11, %cst_115 {dimension_numbers = #tpu.dot_dimension_numbers<[1], [0], [0], [1], [0, 0, 1, 1], [], []>} : vector<8x128xbf16>, vector<128x512xbf16>, vector<8x512xf32> -> vector<8x512xf32>
    %314 = arith.addf %311, %313 : vector<8x512xf32>
    %315 = vector.extract_strided_slice %314 {offsets = [0, 0], sizes = [8, 128], strides = [1, 1]} : vector<8x512xf32> to vector<8x128xf32>
    %cst_116 = arith.constant 5.000000e-01 : f32
    %316 = vector.broadcast %cst_116 : f32 to vector<8x128xf32>
    %317 = arith.mulf %316, %315 : vector<8x128xf32>
    %318 = math.tanh %317 : vector<8x128xf32>
    %cst_117 = arith.constant 5.000000e-01 : f32
    %319 = vector.broadcast %cst_117 : f32 to vector<8x128xf32>
    %320 = arith.mulf %319, %318 : vector<8x128xf32>
    %cst_118 = arith.constant 5.000000e-01 : f32
    %321 = vector.broadcast %cst_118 : f32 to vector<8x128xf32>
    %322 = arith.addf %320, %321 : vector<8x128xf32>
    %323 = vector.extract_strided_slice %314 {offsets = [0, 128], sizes = [8, 128], strides = [1, 1]} : vector<8x512xf32> to vector<8x128xf32>
    %cst_119 = arith.constant 5.000000e-01 : f32
    %324 = vector.broadcast %cst_119 : f32 to vector<8x128xf32>
    %325 = arith.mulf %324, %323 : vector<8x128xf32>
    %326 = math.tanh %325 : vector<8x128xf32>
    %cst_120 = arith.constant 5.000000e-01 : f32
    %327 = vector.broadcast %cst_120 : f32 to vector<8x128xf32>
    %328 = arith.mulf %327, %326 : vector<8x128xf32>
    %cst_121 = arith.constant 5.000000e-01 : f32
    %329 = vector.broadcast %cst_121 : f32 to vector<8x128xf32>
    %330 = arith.addf %328, %329 : vector<8x128xf32>
    %331 = vector.extract_strided_slice %314 {offsets = [0, 256], sizes = [8, 128], strides = [1, 1]} : vector<8x512xf32> to vector<8x128xf32>
    %332 = math.tanh %331 : vector<8x128xf32>
    %333 = vector.extract_strided_slice %314 {offsets = [0, 384], sizes = [8, 128], strides = [1, 1]} : vector<8x512xf32> to vector<8x128xf32>
    %cst_122 = arith.constant 5.000000e-01 : f32
    %334 = vector.broadcast %cst_122 : f32 to vector<8x128xf32>
    %335 = arith.mulf %334, %333 : vector<8x128xf32>
    %336 = math.tanh %335 : vector<8x128xf32>
    %cst_123 = arith.constant 5.000000e-01 : f32
    %337 = vector.broadcast %cst_123 : f32 to vector<8x128xf32>
    %338 = arith.mulf %337, %336 : vector<8x128xf32>
    %cst_124 = arith.constant 5.000000e-01 : f32
    %339 = vector.broadcast %cst_124 : f32 to vector<8x128xf32>
    %340 = arith.addf %338, %339 : vector<8x128xf32>
    %341 = arith.mulf %322, %301 : vector<8x128xf32>
    %342 = arith.mulf %330, %332 : vector<8x128xf32>
    %343 = arith.addf %341, %342 : vector<8x128xf32>
    %344 = math.tanh %343 : vector<8x128xf32>
    %345 = arith.mulf %340, %344 : vector<8x128xf32>
    %346 = arith.index_cast %c7_i32 : i32 to index
    %c0_125 = arith.constant 0 : index
    %c0_126 = arith.constant 0 : index
    %347 = vector.load %arg8[%346, %c0_125, %c0_126] : memref<8x8x128xf32, #tpu.memory_space<vmem>>, vector<1x8x128xf32>
    %348 = vector.shape_cast %347 : vector<1x8x128xf32> to vector<8x128xf32>
    %349 = vector.shape_cast %345 : vector<8x128xf32> to vector<1x8x128xf32>
    tpu.vector_store %arg8[%346, %c0_125, %c0_126], %349 {strides = array<i32>} : memref<8x8x128xf32, #tpu.memory_space<vmem>>, vector<1x8x128xf32>,
    %c8_i32_127 = arith.constant 8 : i32
    %c0_128 = arith.constant 0 : index
    %c0_129 = arith.constant 0 : index
    %350 = vector.load %arg11[%c0_128, %c0_129] : memref<8x128xf32, #tpu.memory_space<vmem>>, vector<8x128xf32>
    tpu.vector_store %arg11[%c0_128, %c0_129], %345 {strides = array<i32>} : memref<8x128xf32, #tpu.memory_space<vmem>>, vector<8x128xf32>,
    %c0_130 = arith.constant 0 : index
    %c0_131 = arith.constant 0 : index
    %351 = vector.load %arg12[%c0_130, %c0_131] : memref<8x128xf32, #tpu.memory_space<vmem>>, vector<8x128xf32>
    tpu.vector_store %arg12[%c0_130, %c0_131], %343 {strides = array<i32>} : memref<8x128xf32, #tpu.memory_space<vmem>>, vector<8x128xf32>,
    %c0_i32_132 = arith.constant 0 : i32
    %352 = arith.cmpi eq, %arg1, %c0_i32_132 : i32
    %353 = arith.extui %352 : i1 to i32
    %c0_i32_133 = arith.constant 0 : i32
    %354 = arith.cmpi ne, %353, %c0_i32_133 : i32
    scf.if %354 {
      %c0_134 = arith.constant 0 : index
      %c0_135 = arith.constant 0 : index
      %355 = vector.load %arg9[%c0_134, %c0_135] : memref<8x128xf32, #tpu.memory_space<vmem>>, vector<8x128xf32>
      tpu.vector_store %arg9[%c0_134, %c0_135], %345 {strides = array<i32>} : memref<8x128xf32, #tpu.memory_space<vmem>>, vector<8x128xf32>,
      %c0_136 = arith.constant 0 : index
      %c0_137 = arith.constant 0 : index
      %356 = vector.load %arg10[%c0_136, %c0_137] : memref<8x128xf32, #tpu.memory_space<vmem>>, vector<8x128xf32>
      tpu.vector_store %arg10[%c0_136, %c0_137], %343 {strides = array<i32>} : memref<8x128xf32, #tpu.memory_space<vmem>>, vector<8x128xf32>,
    } else {
    }
    return
  }
  func.func @transform_0(%arg0: i32, %arg1: i32) -> (i32, i32, i32) {
    %c0_i32 = arith.constant 0 : i32
    %c0_i32_0 = arith.constant 0 : i32
    return %arg1, %arg0, %c0_i32 : i32, i32, i32
  }
  func.func @transform_1(%arg0: i32, %arg1: i32) -> (i32, i32) {
    %c0_i32 = arith.constant 0 : i32
    %c0_i32_0 = arith.constant 0 : i32
    %c0_i32_1 = arith.constant 0 : i32
    return %c0_i32, %c0_i32_0 : i32, i32
  }
  func.func @transform_2(%arg0: i32, %arg1: i32) -> (i32, i32) {
    %c0_i32 = arith.constant 0 : i32
    %c0_i32_0 = arith.constant 0 : i32
    %c0_i32_1 = arith.constant 0 : i32
    return %c0_i32, %c0_i32_0 : i32, i32
  }
  func.func @transform_3(%arg0: i32, %arg1: i32) -> (i32, i32) {
    %c0_i32 = arith.constant 0 : i32
    %c0_i32_0 = arith.constant 0 : i32
    %c0_i32_1 = arith.constant 0 : i32
    return %c0_i32, %c0_i32_0 : i32, i32
  }
  func.func @transform_4(%arg0: i32, %arg1: i32) -> (i32, i32) {
    %c0_i32 = arith.constant 0 : i32
    %c0_i32_0 = arith.constant 0 : i32
    return %arg0, %c0_i32 : i32, i32
  }
  func.func @transform_5(%arg0: i32, %arg1: i32) -> (i32, i32) {
    %c0_i32 = arith.constant 0 : i32
    %c0_i32_0 = arith.constant 0 : i32
    return %arg0, %c0_i32 : i32, i32
  }
  func.func @transform_6(%arg0: i32, %arg1: i32) -> (i32, i32, i32) {
    %c0_i32 = arith.constant 0 : i32
    %c0_i32_0 = arith.constant 0 : i32
    return %arg1, %arg0, %c0_i32 : i32, i32, i32
  }
  func.func @transform_7(%arg0: i32, %arg1: i32) -> (i32, i32) {
    %c0_i32 = arith.constant 0 : i32
    %c0_i32_0 = arith.constant 0 : i32
    return %arg0, %c0_i32 : i32, i32
  }
  func.func @transform_8(%arg0: i32, %arg1: i32) -> (i32, i32) {
    %c0_i32 = arith.constant 0 : i32
    %c0_i32_0 = arith.constant 0 : i32
    return %arg0, %c0_i32 : i32, i32
  }
}

</mosaic_0001>

<bundles_post_ra>
// kernel: tpu_custom_call.1
= control target key start
LH: loop header
LB: loop body
LE: loop exit
PB: predicated region body
PF: predicated region fallthrough
CT: control target
= control target key end

     0   :  { %14 = vsyncpa [#allocation6], 0  ;;  %s2638_s0 = inlined_call_operand.hbm [shape: bf16[8,8,128], index: 0, kind: input, shape index: {}]   ;;  %s2639_s1 = inlined_call_operand.hbm [shape: bf16[128,512], index: 1, kind: input, shape index: {}]   ;;  %s2640_s2 = inlined_call_operand.hbm [shape: bf16[128,512], index: 2, kind: input, shape index: {}]   ;;  %s2641_s3 = inlined_call_operand.hbm [shape: f32[1,512], index: 3, kind: input, shape index: {}]   ;;  %s2642_s4 = inlined_call_operand.hbm [shape: f32[8,128], index: 4, kind: input, shape index: {}]   ;;  %s2643_s5 = inlined_call_operand.hbm [shape: f32[8,128], index: 5, kind: input, shape index: {}]   ;;  %s2644_s6 = inlined_call_operand.hbm [shape: f32[8,8,128], index: 6, kind: output, shape index: {0}]   ;;  %s2645_s7 = inlined_call_operand.hbm [shape: f32[8,128], index: 7, kind: output, shape index: {1}]   ;;  %s2646_s8 = inlined_call_operand.hbm [shape: f32[8,128], index: 8, kind: output, shape index: {2}]  }
   0x1   :  { %15 = vsyncpa [#allocation9], 0 }
   0x2   :  { %16 = vsyncpa [#allocation12], 0 }
   0x3   :  { %17 = vsyncpa [#allocation15], 0 }
   0x4   :  { %18 = vsyncpa [#allocation7], 0  ;;  %s37_s29 = sshll.u32 %s2639_s1, 4  ;;  %s38_s29 = int_to_ptr.hbm [resolvable:$true] %s37_s29 }
   0x5   :  { %19 = vsyncpa [#allocation18], 0  ;;  %s2101_s30 = smov [#allocation8]   ;;  %s64_s12 = sshll.u32 %s2641_s3, 4  ;;  %s65_s12 = int_to_ptr.hbm [resolvable:$true] %s64_s12 }
   0x6   :  { %s39_s9 = sshll.u32 %s2101_s30, 4  ;;  %s2102_s13 = smov 256   ;;  %s40_s9 = int_to_ptr.vmem [resolvable:$true] %s39_s9 }
   0x7   :  { %s2103_s14 = smov 16   ;;  %s2104_s15 = smov [#allocation11]  }
   0x8   :  { %45 = dma.hbm_to_vmem [thread:$0]  %s38_s29, 4096, %s40_s9, [#allocation9], %s2102_s13, %s2102_s13, %s2103_s14  }
   0x9   :  { %s66_s16 = sshll.u32 %s2104_s15, 4  ;;  %s24_s19 = sshll.u32 %s2638_s0, 4  ;;  %s67_s16 = int_to_ptr.vmem [resolvable:$true] %s66_s16  ;;  %s25_s19 = int_to_ptr.hbm [resolvable:$true] %s24_s19 }
   0xa   :  { %69 = dma.hbm_to_vmem [thread:$0]  %s65_s12, 64, %s67_s16, [#allocation12]  }
   0xb   :  { %s2105_s1 = smov [#allocation5]   ;;  %s50_s3 = sshll.u32 %s2640_s2, 4  ;;  %s51_s3 = int_to_ptr.hbm [resolvable:$true] %s50_s3 }
   0xc   :  { %s26_s20 = sshll.u32 %s2105_s1, 4  ;;  %s2106_s23 = smov 64   ;;  %s27_s20 = int_to_ptr.vmem [resolvable:$true] %s26_s20 }
   0xd   :  { %s2107_s24 = smov 4   ;;  %s2108_s25 = smov [#allocation10]  }
   0xe   :  { %32 = dma.hbm_to_vmem [thread:$0]  %s25_s19, 512, %s27_s20, [#allocation6], %s2106_s23, %s2106_s23, %s2107_s24  }
   0xf   :  { %s52_s26 = sshll.u32 %s2108_s25, 4  ;;  %s75_s0 = sshll.u32 %s2642_s4, 4  ;;  %s53_s26 = int_to_ptr.vmem [resolvable:$true] %s52_s26  ;;  %s76_s0 = int_to_ptr.hbm [resolvable:$true] %s75_s0 }
  0x10   :  { %58 = dma.hbm_to_vmem [thread:$0]  %s51_s3, 4096, %s53_s26, [#allocation9], %s2102_s13, %s2102_s13, %s2103_s14  }
  0x11   :  { %s86_s9 = sshll.u32 %s2643_s5, 4  ;;  %s2109_s10 = smov [#allocation13]   ;;  %s87_s9 = int_to_ptr.hbm [resolvable:$true] %s86_s9 }
  0x12   :  { %s77_s11 = sshll.u32 %s2109_s10, 4  ;;  %s2110_s2 = smov [#allocation14]   ;;  %s78_s11 = int_to_ptr.vmem [resolvable:$true] %s77_s11 }
  0x13   :  { %80 = dma.hbm_to_vmem [thread:$0]  %s76_s0, 128, %s78_s11, [#allocation12]  }
  0x14   :  { %s88_s12 = sshll.u32 %s2110_s2, 4  ;;  %s89_s12 = int_to_ptr.vmem [resolvable:$true] %s88_s12 }
  0x15   :  { %91 = dma.hbm_to_vmem [thread:$0]  %s87_s9, 128, %s89_s12, [#allocation15]  }
  0x16   :  { %2089 = dma.done.wait [#allocation6], 512  }
  0x17   :  { %2090 = vsyncadd [#allocation6], 4294966784 }
  0x18   :  { %2091 = dma.done.wait [#allocation9], 8192  }
  0x19   :  { %2092 = vsyncadd [#allocation9], 4294959104 }
  0x1a   :  { %2093 = dma.done.wait [#allocation12], 192  }
  0x1b   :  { %2094 = vsyncadd [#allocation12], 4294967104 }
  0x1c   :  { %2095 = dma.done.wait [#allocation15], 128  }
  0x1d   :  { %2096 = vsyncadd [#allocation15], 4294967168  ;;  %v1568_v0 = vld [vmem:[#allocation8 + $0xe0] sm:$0xf]  ;;  %v1744_v1 = vld [vmem:[#allocation8 + $0xec] sm:$0xf0] }
  0x1e   :  { %v1742_v2 = vld [vmem:[#allocation8 + $0xe4] sm:$0xf]  ;;  %v1569_v3 = vor.u32 %v1744_v1, %v1568_v0  ;;  %v1570_v4 = vld [vmem:[#allocation8 + $0xf0] sm:$0xf0]  ;;  %v1576_v5 = vld [vmem:[#allocation8 + $0xe8] sm:$0xf] }
  0x1f   :  { %v1745_v6 = vld [vmem:[#allocation8 + $0xf4] sm:$0xf0]  ;;  %v1573_v7 = vor.u32 %v1742_v2, %v1570_v4  ;;  %v1743_v9 = vld [vmem:[#allocation8 + $0xec] sm:$0xf]  ;;  %v1578_v10 = vld [vmem:[#allocation8 + $0xf8] sm:$0xf0] }
  0x20   :  { %v1577_v8 = vor.u32 %v1745_v6, %v1576_v5  ;;  %v1552_v11 = vld [vmem:[#allocation8 + $0xc0] sm:$0xf]  ;;  %358 = vmatpush.bf16.msra.mxu0 %v1569_v3  ;;  %v1581_v12 = vor.u32 %v1743_v9, %v1578_v10  ;;  %v1740_v13 = vld [vmem:[#allocation8 + $0xcc] sm:$0xf0]  ;;  %v1738_v14 = vld [vmem:[#allocation8 + $0xc4] sm:$0xf] }
  0x21   :  { %v1554_v15 = vld [vmem:[#allocation8 + $0xd0] sm:$0xf0]  ;;  %387 = vmatpush.bf16.msra.mxu1 %v1573_v7  ;;  %v1553_v16 = vor.u32 %v1740_v13, %v1552_v11  ;;  %v1560_v18 = vld [vmem:[#allocation8 + $0xc8] sm:$0xf]  ;;  %v1741_v19 = vld [vmem:[#allocation8 + $0xd4] sm:$0xf0] }
  0x22   :  { %416 = vmatpush.bf16.msra.mxu2 %v1577_v8  ;;  %v1557_v17 = vor.u32 %v1738_v14, %v1554_v15  ;;  %v1739_v20 = vld [vmem:[#allocation8 + $0xcc] sm:$0xf]  ;;  %445 = vmatpush.bf16.msra.mxu3 %v1581_v12  ;;  %v1561_v21 = vor.u32 %v1741_v19, %v1560_v18  ;;  %v1562_v22 = vld [vmem:[#allocation8 + $0xd8] sm:$0xf0]  ;;  %v1536_v23 = vld [vmem:[#allocation8 + $0xa0] sm:$0xf] }
  0x23   :  { %v1736_v24 = vld [vmem:[#allocation8 + $0xac] sm:$0xf0]  ;;  %v1565_v25 = vor.u32 %v1739_v20, %v1562_v22  ;;  %v1734_v26 = vld [vmem:[#allocation8 + $0xa4] sm:$0xf]  ;;  %v1538_v27 = vld [vmem:[#allocation8 + $0xb0] sm:$0xf0] }
  0x24   :  { %v1544_v28 = vld [vmem:[#allocation8 + $0xa8] sm:$0xf]  ;;  %359 = vmatpush.bf16.msra.mxu0 %v1553_v16  ;;  %v1537_v29 = vor.u32 %v1736_v24, %v1536_v23  ;;  %v1737_v30 = vld [vmem:[#allocation8 + $0xb4] sm:$0xf0]  ;;  %v1735_v31 = vld [vmem:[#allocation8 + $0xac] sm:$0xf]  ;;  %v1541_v33 = vor.u32 %v1734_v26, %v1538_v27 }
  0x25   :  { %v1546_v32 = vld [vmem:[#allocation8 + $0xb8] sm:$0xf0]  ;;  %388 = vmatpush.bf16.msra.mxu1 %v1557_v17  ;;  %v1545_v34 = vor.u32 %v1737_v30, %v1544_v28  ;;  %v1520_v35 = vld [vmem:[#allocation8 + $0x80] sm:$0xf]  ;;  %v1732_v36 = vld [vmem:[#allocation8 + $0x8c] sm:$0xf0] }
  0x26   :  { %417 = vmatpush.bf16.msra.mxu2 %v1561_v21  ;;  %v1730_v37 = vld [vmem:[#allocation8 + $0x84] sm:$0xf]  ;;  %446 = vmatpush.bf16.msra.mxu3 %v1565_v25  ;;  %v1549_v38 = vor.u32 %v1735_v31, %v1546_v32  ;;  %v1522_v39 = vld [vmem:[#allocation8 + $0x90] sm:$0xf0]  ;;  %v1528_v40 = vld [vmem:[#allocation8 + $0x88] sm:$0xf]  ;;  %v1521_v44 = vor.u32 %v1732_v36, %v1520_v35 }
  0x27   :  { %v1733_v41 = vld [vmem:[#allocation8 + $0x94] sm:$0xf0]  ;;  %v1731_v42 = vld [vmem:[#allocation8 + $0x8c] sm:$0xf]  ;;  %v1530_v43 = vld [vmem:[#allocation8 + $0x98] sm:$0xf0]  ;;  %v1525_v45 = vor.u32 %v1730_v37, %v1522_v39 }
  0x28   :  { %360 = vmatpush.bf16.msra.mxu0 %v1537_v29  ;;  %v1529_v46 = vor.u32 %v1733_v41, %v1528_v40  ;;  %v1504_v47 = vld [vmem:[#allocation8 + $0x60] sm:$0xf]  ;;  %v1728_v48 = vld [vmem:[#allocation8 + $0x6c] sm:$0xf0]  ;;  %v1726_v49 = vld [vmem:[#allocation8 + $0x64] sm:$0xf]  ;;  %v1533_v50 = vor.u32 %v1731_v42, %v1530_v43 }
  0x29   :  { %389 = vmatpush.bf16.msra.mxu1 %v1541_v33  ;;  %v1506_v51 = vld [vmem:[#allocation8 + $0x70] sm:$0xf0]  ;;  %v1512_v52 = vld [vmem:[#allocation8 + $0x68] sm:$0xf]  ;;  %v1729_v53 = vld [vmem:[#allocation8 + $0x74] sm:$0xf0]  ;;  %v1505_v56 = vor.u32 %v1728_v48, %v1504_v47 }
  0x2a   :  { %418 = vmatpush.bf16.msra.mxu2 %v1545_v34  ;;  %447 = vmatpush.bf16.msra.mxu3 %v1549_v38  ;;  %v1727_v54 = vld [vmem:[#allocation8 + $0x6c] sm:$0xf]  ;;  %v1514_v55 = vld [vmem:[#allocation8 + $0x78] sm:$0xf0]  ;;  %v1509_v57 = vor.u32 %v1726_v49, %v1506_v51  ;;  %v1513_v58 = vor.u32 %v1729_v53, %v1512_v52  ;;  %v1488_v59 = vld [vmem:[#allocation8 + $0x40] sm:$0xf] }
  0x2b   :  { %v1724_v60 = vld [vmem:[#allocation8 + $0x4c] sm:$0xf0]  ;;  %v1722_v61 = vld [vmem:[#allocation8 + $0x44] sm:$0xf]  ;;  %v1517_v62 = vor.u32 %v1727_v54, %v1514_v55  ;;  %v1490_v63 = vld [vmem:[#allocation8 + $0x50] sm:$0xf0] }
  0x2c   :  { %361 = vmatpush.bf16.msra.mxu0 %v1521_v44  ;;  %v1496_v0 = vld [vmem:[#allocation8 + $0x48] sm:$0xf]  ;;  %v1725_v1 = vld [vmem:[#allocation8 + $0x54] sm:$0xf0]  ;;  %v1723_v2 = vld [vmem:[#allocation8 + $0x4c] sm:$0xf]  ;;  %v1489_v4 = vor.u32 %v1724_v60, %v1488_v59  ;;  %v1493_v5 = vor.u32 %v1722_v61, %v1490_v63 }
  0x2d   :  { %390 = vmatpush.bf16.msra.mxu1 %v1525_v45  ;;  %v1498_v3 = vld [vmem:[#allocation8 + $0x58] sm:$0xf0]  ;;  %v1497_v6 = vor.u32 %v1725_v1, %v1496_v0  ;;  %v1472_v7 = vld [vmem:[#allocation8 + $0x20] sm:$0xf]  ;;  %v1720_v8 = vld [vmem:[#allocation8 + $0x2c] sm:$0xf0] }
  0x2e   :  { %419 = vmatpush.bf16.msra.mxu2 %v1529_v46  ;;  %448 = vmatpush.bf16.msra.mxu3 %v1533_v50  ;;  %v1718_v9 = vld [vmem:[#allocation8 + $0x24] sm:$0xf]  ;;  %v1501_v10 = vor.u32 %v1723_v2, %v1498_v3  ;;  %v1474_v11 = vld [vmem:[#allocation8 + $0x30] sm:$0xf0]  ;;  %v1480_v12 = vld [vmem:[#allocation8 + $0x28] sm:$0xf]  ;;  %v1473_v16 = vor.u32 %v1720_v8, %v1472_v7 }
  0x2f   :  { %v1721_v13 = vld [vmem:[#allocation8 + $0x34] sm:$0xf0]  ;;  %v1719_v14 = vld [vmem:[#allocation8 + $0x2c] sm:$0xf]  ;;  %v1482_v15 = vld [vmem:[#allocation8 + $0x38] sm:$0xf0]  ;;  %v1477_v18 = vor.u32 %v1718_v9, %v1474_v11 }
  0x30   :  { %362 = vmatpush.bf16.msra.mxu0 %v1505_v56  ;;  %v1456_v17 = vld [vmem:[#allocation8] sm:$0xf]  ;;  %v1481_v19 = vor.u32 %v1721_v13, %v1480_v12  ;;  %v1716_v20 = vld [vmem:[#allocation8 + $0xc] sm:$0xf0]  ;;  %v1714_v21 = vld [vmem:[#allocation8 + $0x4] sm:$0xf]  ;;  %v1485_v23 = vor.u32 %v1719_v14, %v1482_v15 }
  0x31   :  { %391 = vmatpush.bf16.msra.mxu1 %v1509_v57  ;;  %v1458_v22 = vld [vmem:[#allocation8 + $0x10] sm:$0xf0]  ;;  %v1464_v24 = vld [vmem:[#allocation8 + $0x8] sm:$0xf]  ;;  %v1717_v25 = vld [vmem:[#allocation8 + $0x14] sm:$0xf0]  ;;  %v1457_v30 = vor.u32 %v1716_v20, %v1456_v17 }
  0x32   :  { %420 = vmatpush.bf16.msra.mxu2 %v1513_v58  ;;  %449 = vmatpush.bf16.msra.mxu3 %v1517_v62  ;;  %v1715_v26 = vld [vmem:[#allocation8 + $0xc] sm:$0xf]  ;;  %v1466_v27 = vld [vmem:[#allocation8 + $0x18] sm:$0xf0]  ;;  %v1696_v28 = vld [vmem:[#allocation10 + $0xe0] sm:$0xf]  ;;  %v1461_v33 = vor.u32 %v1714_v21, %v1458_v22  ;;  %v1465_v34 = vor.u32 %v1717_v25, %v1464_v24 }
  0x33   :  { %v1776_v29 = vld [vmem:[#allocation10 + $0xec] sm:$0xf0]  ;;  %v1774_v31 = vld [vmem:[#allocation10 + $0xe4] sm:$0xf]  ;;  %v1698_v32 = vld [vmem:[#allocation10 + $0xf0] sm:$0xf0]  ;;  %v1469_v36 = vor.u32 %v1715_v26, %v1466_v27 }
  0x34   :  { %363 = vmatpush.bf16.msra.mxu0 %v1489_v4  ;;  %v1710_v35 = vld [vmem:[#allocation5] sm:$0xff]  ;;  %v2179_v37 = vor.u32 %v1776_v29, %v1696_v28  ;;  %v1704_v38 = vld [vmem:[#allocation10 + $0xe8] sm:$0xf]  ;;  %v1777_v39 = vld [vmem:[#allocation10 + $0xf4] sm:$0xf0]  ;;  %v2181_v41 = vor.u32 %v1774_v31, %v1698_v32  ;;  %s2111_s4 = smov [#allocation16]  }
  0x35   :  { %392 = vmatpush.bf16.msra.mxu1 %v1493_v5  ;;  %v1775_v40 = vld [vmem:[#allocation10 + $0xec] sm:$0xf]  ;;  %v1706_v42 = vld [vmem:[#allocation10 + $0xf8] sm:$0xf0]  ;;  %v1680_v43 = vld [vmem:[#allocation10 + $0xc0] sm:$0xf]  ;;  %v2183_v47 = vor.u32 %v1777_v39, %v1704_v38 }
  0x36   :  { %421 = vmatpush.bf16.msra.mxu2 %v1497_v6  ;;  %450 = vmatpush.bf16.msra.mxu3 %v1501_v10  ;;  %v1772_v44 = vld [vmem:[#allocation10 + $0xcc] sm:$0xf0]  ;;  %v1770_v45 = vld [vmem:[#allocation10 + $0xc4] sm:$0xf]  ;;  %v1682_v46 = vld [vmem:[#allocation10 + $0xd0] sm:$0xf0]  ;;  %v2186_v48 = vor.u32 %v1775_v40, %v1706_v42 }
  0x37   :  { %v2188_v49 = vor.u32 %v1772_v44, %v1680_v43  ;;  %v1688_v50 = vld [vmem:[#allocation10 + $0xc8] sm:$0xf]  ;;  %v1773_v51 = vld [vmem:[#allocation10 + $0xd4] sm:$0xf0]  ;;  %v1771_v52 = vld [vmem:[#allocation10 + $0xcc] sm:$0xf]  ;;  %v2191_v53 = vor.u32 %v1770_v45, %v1682_v46 }
  0x38   :  { %364 = vmatpush.bf16.msra.mxu0 %v1473_v16  ;;  %v1690_v54 = vld [vmem:[#allocation10 + $0xd8] sm:$0xf0]  ;;  %v1664_v55 = vld [vmem:[#allocation10 + $0xa0] sm:$0xf]  ;;  %v1768_v56 = vld [vmem:[#allocation10 + $0xac] sm:$0xf0]  ;;  %v2194_v59 = vor.u32 %v1773_v51, %v1688_v50 }
  0x39   :  { %393 = vmatpush.bf16.msra.mxu1 %v1477_v18  ;;  %v1766_v57 = vld [vmem:[#allocation10 + $0xa4] sm:$0xf]  ;;  %v1666_v58 = vld [vmem:[#allocation10 + $0xb0] sm:$0xf0]  ;;  %v2198_v60 = vor.u32 %v1771_v52, %v1690_v54  ;;  %v2200_v61 = vor.u32 %v1768_v56, %v1664_v55  ;;  %v1672_v62 = vld [vmem:[#allocation10 + $0xa8] sm:$0xf] }
  0x3a   :  { %422 = vmatpush.bf16.msra.mxu2 %v1481_v19  ;;  %451 = vmatpush.bf16.msra.mxu3 %v1485_v23  ;;  %v1769_v63 = vld [vmem:[#allocation10 + $0xb4] sm:$0xf0]  ;;  %v1767_v0 = vld [vmem:[#allocation10 + $0xac] sm:$0xf]  ;;  %v2203_v1 = vor.u32 %v1766_v57, %v1666_v58  ;;  %v1674_v2 = vld [vmem:[#allocation10 + $0xb8] sm:$0xf0] }
  0x3b   :  { %v1648_v3 = vld [vmem:[#allocation10 + $0x80] sm:$0xf]  ;;  %v1764_v4 = vld [vmem:[#allocation10 + $0x8c] sm:$0xf0]  ;;  %v1762_v5 = vld [vmem:[#allocation10 + $0x84] sm:$0xf]  ;;  %v2206_v7 = vor.u32 %v1769_v63, %v1672_v62  ;;  %v2210_v8 = vor.u32 %v1767_v0, %v1674_v2 }
  0x3c   :  { %365 = vmatpush.bf16.msra.mxu0 %v1457_v30  ;;  %v1650_v6 = vld [vmem:[#allocation10 + $0x90] sm:$0xf0]  ;;  %v2212_v9 = vor.u32 %v1764_v4, %v1648_v3  ;;  %v1656_v10 = vld [vmem:[#allocation10 + $0x88] sm:$0xf]  ;;  %v1765_v11 = vld [vmem:[#allocation10 + $0x94] sm:$0xf0] }
  0x3d   :  { %394 = vmatpush.bf16.msra.mxu1 %v1461_v33  ;;  %v1763_v12 = vld [vmem:[#allocation10 + $0x8c] sm:$0xf]  ;;  %v2215_v13 = vor.u32 %v1762_v5, %v1650_v6  ;;  %v1658_v14 = vld [vmem:[#allocation10 + $0x98] sm:$0xf0]  ;;  %v1632_v15 = vld [vmem:[#allocation10 + $0x60] sm:$0xf]  ;;  %v2218_v20 = vor.u32 %v1765_v11, %v1656_v10 }
  0x3e   :  { %423 = vmatpush.bf16.msra.mxu2 %v1465_v34  ;;  %452 = vmatpush.bf16.msra.mxu3 %v1469_v36  ;;  %v1760_v16 = vld [vmem:[#allocation10 + $0x6c] sm:$0xf0]  ;;  %v1758_v17 = vld [vmem:[#allocation10 + $0x64] sm:$0xf]  ;;  %v1634_v18 = vld [vmem:[#allocation10 + $0x70] sm:$0xf0]  ;;  %v2222_v21 = vor.u32 %v1763_v12, %v1658_v14 }
  0x3f   :  { %366 = vmatmul.bf16.vlgmr.msra.gmra.mxu0 %v1710_v35  ;;  %v1711_v19 = vld [vmem:[#allocation5 + $0x8] sm:$0xff]  ;;  %v2224_v22 = vor.u32 %v1760_v16, %v1632_v15  ;;  %v1761_v24 = vld [vmem:[#allocation10 + $0x74] sm:$0xf0]  ;;  %v2227_v26 = vor.u32 %v1758_v17, %v1634_v18  ;;  %v1642_v27 = vld [vmem:[#allocation10 + $0x78] sm:$0xf0]  ;;  %s1382_s5 = sshll.u32 %s2111_s4, 4  ;;  %s1383_s5 = int_to_ptr.vmem [resolvable:$true] %s1382_s5 }
  0x40   :  { %708 = vmatpush.bf16.msrb.mxu0 %v2179_v37  ;;  %395 = vmatmul.bf16.vlgmr.msra.gmra.mxu1 %v1710_v35  ;;  %v1640_v23 = vld [vmem:[#allocation10 + $0x68] sm:$0xf]  ;;  %v1759_v25 = vld [vmem:[#allocation10 + $0x6c] sm:$0xf]  ;;  %v1616_v28 = vld [vmem:[#allocation10 + $0x40] sm:$0xf] }
  0x41   :  { %721 = vmatpush.bf16.msrb.mxu1 %v2181_v41  ;;  %424 = vmatmul.bf16.vlgmr.msra.gmra.mxu2 %v1710_v35  ;;  %v1756_v29 = vld [vmem:[#allocation10 + $0x4c] sm:$0xf0]  ;;  %v1754_v30 = vld [vmem:[#allocation10 + $0x44] sm:$0xf]  ;;  %v1618_v31 = vld [vmem:[#allocation10 + $0x50] sm:$0xf0]  ;;  %v2230_v32 = vor.u32 %v1761_v24, %v1640_v23  ;;  %v2234_v33 = vor.u32 %v1759_v25, %v1642_v27 }
  0x42   :  { %453 = vmatmul.bf16.vlgmr.msra.gmra.mxu3 %v1710_v35  ;;  %734 = vmatpush.bf16.msrb.mxu2 %v2183_v47  ;;  %v2236_v34 = vor.u32 %v1756_v29, %v1616_v28  ;;  %v1624_v35 = vld [vmem:[#allocation10 + $0x48] sm:$0xf]  ;;  %v1757_v36 = vld [vmem:[#allocation10 + $0x54] sm:$0xf0]  ;;  %v2239_v38 = vor.u32 %v1754_v30, %v1618_v31  ;;  %v1755_v39 = vld [vmem:[#allocation10 + $0x4c] sm:$0xf] }
  0x43   :  { %747 = vmatpush.bf16.msrb.mxu3 %v2186_v48  ;;  %v1626_v40 = vld [vmem:[#allocation10 + $0x58] sm:$0xf0]  ;;  %v2242_v42 = vor.u32 %v1757_v36, %v1624_v35  ;;  %v1600_v43 = vld [vmem:[#allocation10 + $0x20] sm:$0xf]  ;;  %v1752_v44 = vld [vmem:[#allocation10 + $0x2c] sm:$0xf0] }
  0x44   :  { %709 = vmatpush.bf16.msrb.mxu0 %v2188_v49  ;;  %v1750_v45 = vld [vmem:[#allocation10 + $0x24] sm:$0xf]  ;;  %v2246_v46 = vor.u32 %v1755_v39, %v1626_v40  ;;  %v2248_v50 = vor.u32 %v1752_v44, %v1600_v43  ;;  %v1602_v51 = vld [vmem:[#allocation10 + $0x30] sm:$0xf0]  ;;  %v1608_v52 = vld [vmem:[#allocation10 + $0x28] sm:$0xf] }
  0x45   :  { %722 = vmatpush.bf16.msrb.mxu1 %v2191_v53  ;;  %v1753_v54 = vld [vmem:[#allocation10 + $0x34] sm:$0xf0]  ;;  %v2251_v55 = vor.u32 %v1750_v45, %v1602_v51  ;;  %v1751_v56 = vld [vmem:[#allocation10 + $0x2c] sm:$0xf]  ;;  %v1610_v57 = vld [vmem:[#allocation10 + $0x38] sm:$0xf0] }
  0x46   :  { %735 = vmatpush.bf16.msrb.mxu2 %v2194_v59  ;;  %v1584_v58 = vld [vmem:[#allocation10] sm:$0xf]  ;;  %v1748_v62 = vld [vmem:[#allocation10 + $0xc] sm:$0xf0]  ;;  %v1746_v63 = vld [vmem:[#allocation10 + $0x4] sm:$0xf]  ;;  %v2254_v2 = vor.u32 %v1753_v54, %v1608_v52  ;;  %v2258_v3 = vor.u32 %v1751_v56, %v1610_v57 }
  0x47   :  { %748 = vmatpush.bf16.msrb.mxu3 %v2198_v60  ;;  %v1586_v0 = vld [vmem:[#allocation10 + $0x10] sm:$0xf0]  ;;  %v2260_v4 = vor.u32 %v1748_v62, %v1584_v58  ;;  %v1592_v5 = vld [vmem:[#allocation10 + $0x8] sm:$0xf]  ;;  %v1749_v6 = vld [vmem:[#allocation10 + $0x14] sm:$0xf0] }
  0x48   :  { %710 = vmatpush.bf16.msrb.mxu0 %v2200_v61  ;;  %v2263_v10 = vor.u32 %v1746_v63, %v1586_v0  ;;  %v1747_v11 = vld [vmem:[#allocation10 + $0xc] sm:$0xf]  ;;  %v1594_v12 = vld [vmem:[#allocation10 + $0x18] sm:$0xf0]  ;;  %v2266_v14 = vor.u32 %v1749_v6, %v1592_v5  ;;  %v1712_v16 = vld [vmem:[#allocation5 + $0x10] sm:$0xff]  ;;  %s1384_s15 = sshll.u32 %s2644_s6, 4  ;;  %s1385_s15 = int_to_ptr.hbm [resolvable:$true] %s1384_s15 }
  0x49   :  { %723 = vmatpush.bf16.msrb.mxu1 %v2203_v1  ;;  %v2270_v15 = vor.u32 %v1747_v11, %v1594_v12  ;;  %v1713_v17 = vld [vmem:[#allocation5 + $0x18] sm:$0xff]  ;;  %v120_v18 = vld [vmem:[#allocation13] sm:$0xff]  ;;  %v164_v25 = vld [vmem:[#allocation11] sm:$0xf]  ;;  %s2112_s16 = smov [#allocation17]   ;;  %s1398_s1 = sshll.u32 %s2645_s7, 4  ;;  %s1399_s1 = int_to_ptr.hbm [resolvable:$true] %s1398_s1 }
  0x4a   :  { %736 = vmatpush.bf16.msrb.mxu2 %v2206_v7  ;;  %v166_v27 = vperm.slane %v164_v25, 0  ;;  %v167_v29 = vperm.slane %v164_v25, 1  ;;  %v2347_v40 = vperm.slane %v164_v25, 2  ;;  %v2349_v43 = vperm.slane %v164_v25, 3  ;;  %s1396_s17 = sshll.u32 %s2112_s16, 4  ;;  %s2113_s20 = smov [#allocation19]   ;;  %s1397_s17 = int_to_ptr.vmem [resolvable:$true] %s1396_s17 }
  0x4b   :  { %749 = vmatpush.bf16.msrb.mxu3 %v2210_v8  ;;  %s1407_s21 = sshll.u32 %s2113_s20, 4  ;;  %s1409_s23 = sshll.u32 %s2646_s8, 4  ;;  %s1408_s21 = int_to_ptr.vmem [resolvable:$true] %s1407_s21  ;;  %s1410_s23 = int_to_ptr.hbm [resolvable:$true] %s1409_s23 }
  0x4c   :  { %711 = vmatpush.bf16.msrb.mxu0 %v2212_v9  ;;  %s2114_s6 = smov 128   ;;  %s2115_s24 = smov 8  }
  0x4d   :  { %724 = vmatpush.bf16.msrb.mxu1 %v2215_v13 }
  0x4e   :  { %737 = vmatpush.bf16.msrb.mxu2 %v2218_v20 }
  0x4f   :  { %750 = vmatpush.bf16.msrb.mxu3 %v2222_v21  ;;  %371 = vmatmul.bf16.gmra.mxu0 %v1711_v19 }
  0x50   :  { %712 = vmatpush.bf16.msrb.mxu0 %v2224_v22  ;;  %400 = vmatmul.bf16.gmra.mxu1 %v1711_v19 }
  0x51   :  { %725 = vmatpush.bf16.msrb.mxu1 %v2227_v26  ;;  %429 = vmatmul.bf16.gmra.mxu2 %v1711_v19 }
  0x52   :  { %458 = vmatmul.bf16.gmra.mxu3 %v1711_v19  ;;  %738 = vmatpush.bf16.msrb.mxu2 %v2230_v32  ;;  %v547_v19 = vpack.c.bf16 %v120_v18, %v120_v18 }
  0x53   :  { %751 = vmatpush.bf16.msrb.mxu3 %v2234_v33 }
  0x54   :  { %713 = vmatpush.bf16.msrb.mxu0 %v2236_v34 }
  0x55   :  { %726 = vmatpush.bf16.msrb.mxu1 %v2239_v38 }
  0x56   :  { %739 = vmatpush.bf16.msrb.mxu2 %v2242_v42 }
  0x57   :  { %752 = vmatpush.bf16.msrb.mxu3 %v2246_v46 }
  0x58   :  { %714 = vmatpush.bf16.msrb.mxu0 %v2248_v50 }
  0x59   :  { %727 = vmatpush.bf16.msrb.mxu1 %v2251_v55 }
  0x5a   :  { %740 = vmatpush.bf16.msrb.mxu2 %v2254_v2 }
  0x5b   :  { %753 = vmatpush.bf16.msrb.mxu3 %v2258_v3 }
  0x5c   :  { %715 = vmatpush.bf16.msrb.mxu0 %v2260_v4 }
  0x5d   :  { %728 = vmatpush.bf16.msrb.mxu1 %v2263_v10 }
  0x5e   :  { %741 = vmatpush.bf16.msrb.mxu2 %v2266_v14 }
  0x5f   :  { %754 = vmatpush.bf16.msrb.mxu3 %v2270_v15  ;;  %376 = vmatmul.bf16.gmra.mxu0 %v1712_v16 }
  0x60   :  { %791 = vmatpush.bf16.msra.mxu0 %v2179_v37  ;;  %405 = vmatmul.bf16.gmra.mxu1 %v1712_v16 }
  0x61   :  { %804 = vmatpush.bf16.msra.mxu1 %v2181_v41  ;;  %434 = vmatmul.bf16.gmra.mxu2 %v1712_v16 }
  0x62   :  { %817 = vmatpush.bf16.msra.mxu2 %v2183_v47  ;;  %463 = vmatmul.bf16.gmra.mxu3 %v1712_v16 }
  0x63   :  { %830 = vmatpush.bf16.msra.mxu3 %v2186_v48 }
  0x64   :  { %792 = vmatpush.bf16.msra.mxu0 %v2188_v49 }
  0x65   :  { %805 = vmatpush.bf16.msra.mxu1 %v2191_v53 }
  0x66   :  { %818 = vmatpush.bf16.msra.mxu2 %v2194_v59 }
  0x67   :  { %831 = vmatpush.bf16.msra.mxu3 %v2198_v60 }
  0x68   :  { %793 = vmatpush.bf16.msra.mxu0 %v2200_v61 }
  0x69   :  { %806 = vmatpush.bf16.msra.mxu1 %v2203_v1 }
  0x6a   :  { %819 = vmatpush.bf16.msra.mxu2 %v2206_v7 }
  0x6b   :  { %832 = vmatpush.bf16.msra.mxu3 %v2210_v8 }
  0x6c   :  { %794 = vmatpush.bf16.msra.mxu0 %v2212_v9 }
  0x6d   :  { %807 = vmatpush.bf16.msra.mxu1 %v2215_v13 }
  0x6e   :  { %820 = vmatpush.bf16.msra.mxu2 %v2218_v20 }
  0x6f   :  { %833 = vmatpush.bf16.msra.mxu3 %v2222_v21  ;;  %381 = vmatmul.bf16.gmra.mxu0 %v1713_v17 }
  0x70   :  { %795 = vmatpush.bf16.msra.mxu0 %v2224_v22  ;;  %410 = vmatmul.bf16.gmra.mxu1 %v1713_v17 }
  0x71   :  { %808 = vmatpush.bf16.msra.mxu1 %v2227_v26  ;;  %439 = vmatmul.bf16.gmra.mxu2 %v1713_v17 }
  0x72   :  { %821 = vmatpush.bf16.msra.mxu2 %v2230_v32  ;;  %468 = vmatmul.bf16.gmra.mxu3 %v1713_v17 }
  0x73   :  { %834 = vmatpush.bf16.msra.mxu3 %v2234_v33 }
  0x74   :  { %796 = vmatpush.bf16.msra.mxu0 %v2236_v34 }
  0x75   :  { %809 = vmatpush.bf16.msra.mxu1 %v2239_v38 }
  0x76   :  { %822 = vmatpush.bf16.msra.mxu2 %v2242_v42 }
  0x77   :  { %835 = vmatpush.bf16.msra.mxu3 %v2246_v46 }
  0x78   :  { %797 = vmatpush.bf16.msra.mxu0 %v2248_v50 }
  0x79   :  { %810 = vmatpush.bf16.msra.mxu1 %v2251_v55 }
  0x7a   :  { %823 = vmatpush.bf16.msra.mxu2 %v2254_v2 }
  0x7b   :  { %836 = vmatpush.bf16.msra.mxu3 %v2258_v3 }
  0x7c   :  { %798 = vmatpush.bf16.msra.mxu0 %v2260_v4 }
  0x7d   :  { %811 = vmatpush.bf16.msra.mxu1 %v2263_v10 }
  0x7e   :  { %824 = vmatpush.bf16.msra.mxu2 %v2266_v14 }
  0x7f   :  { %837 = vmatpush.bf16.msra.mxu3 %v2270_v15  ;;  %716 = vmatmul.bf16.vlgmr.msrb.gmra.mxu0 %v547_v19 }
  0x80   :  { %729 = vmatmul.bf16.vlgmr.msrb.gmra.mxu1 %v547_v19  ;;  %875 = vmatpush.bf16.msrb.mxu0 %v2179_v37 }
  0x81   :  { %742 = vmatmul.bf16.vlgmr.msrb.gmra.mxu2 %v547_v19  ;;  %888 = vmatpush.bf16.msrb.mxu1 %v2181_v41 }
  0x82   :  { %755 = vmatmul.bf16.vlgmr.msrb.gmra.mxu3 %v547_v19  ;;  %901 = vmatpush.bf16.msrb.mxu2 %v2183_v47 }
  0x83   :  { %914 = vmatpush.bf16.msrb.mxu3 %v2186_v48 }
  0x84   :  { %876 = vmatpush.bf16.msrb.mxu0 %v2188_v49 }
  0x85   :  { %889 = vmatpush.bf16.msrb.mxu1 %v2191_v53 }
  0x86   :  { %902 = vmatpush.bf16.msrb.mxu2 %v2194_v59 }
  0x87   :  { %915 = vmatpush.bf16.msrb.mxu3 %v2198_v60 }
  0x88   :  { %877 = vmatpush.bf16.msrb.mxu0 %v2200_v61 }
  0x89   :  { %890 = vmatpush.bf16.msrb.mxu1 %v2203_v1 }
  0x8a   :  { %903 = vmatpush.bf16.msrb.mxu2 %v2206_v7 }
  0x8b   :  { %916 = vmatpush.bf16.msrb.mxu3 %v2210_v8 }
  0x8c   :  { %878 = vmatpush.bf16.msrb.mxu0 %v2212_v9 }
  0x8d   :  { %891 = vmatpush.bf16.msrb.mxu1 %v2215_v13 }
  0x8e   :  { %904 = vmatpush.bf16.msrb.mxu2 %v2218_v20 }
  0x8f   :  { %917 = vmatpush.bf16.msrb.mxu3 %v2222_v21 }
  0x90   :  { %879 = vmatpush.bf16.msrb.mxu0 %v2224_v22 }
  0x91   :  { %892 = vmatpush.bf16.msrb.mxu1 %v2227_v26 }
  0x92   :  { %905 = vmatpush.bf16.msrb.mxu2 %v2230_v32 }
  0x93   :  { %918 = vmatpush.bf16.msrb.mxu3 %v2234_v33 }
  0x94   :  { %880 = vmatpush.bf16.msrb.mxu0 %v2236_v34 }
  0x95   :  { %893 = vmatpush.bf16.msrb.mxu1 %v2239_v38 }
  0x96   :  { %906 = vmatpush.bf16.msrb.mxu2 %v2242_v42 }
  0x97   :  { %919 = vmatpush.bf16.msrb.mxu3 %v2246_v46 }
  0x98   :  { %881 = vmatpush.bf16.msrb.mxu0 %v2248_v50 }
  0x99   :  { %894 = vmatpush.bf16.msrb.mxu1 %v2251_v55 }
  0x9a   :  { %907 = vmatpush.bf16.msrb.mxu2 %v2254_v2 }
  0x9b   :  { %920 = vmatpush.bf16.msrb.mxu3 %v2258_v3 }
  0x9c   :  { %882 = vmatpush.bf16.msrb.mxu0 %v2260_v4 }
  0x9d   :  { %895 = vmatpush.bf16.msrb.mxu1 %v2263_v10 }
  0x9e   :  { %908 = vmatpush.bf16.msrb.mxu2 %v2266_v14 }
  0x9f   :  { %921 = vmatpush.bf16.msrb.mxu3 %v2270_v15 }
  0xbc   :  { %v367_v23 = vpop.f32.mrf.mxu0 }
  0xbd   :  { %v396_v24 = vpop.f32.mrf.mxu1 }
  0xc4   :  { %v2339_v28 = vpop.f32.mrf.mxu2  ;;  %v369_v31 = vpop.f32.mrf.mxu0 }
  0xc5   :  { %v2341_v30 = vpop.f32.mrf.mxu3  ;;  %v2343_v35 = vadd.f32 %v369_v31, %v166_v27  ;;  %v398_v36 = vpop.f32.mrf.mxu1 }
  0xc6   :  { %v2345_v39 = vadd.f32 %v398_v36, %v167_v29 }
  0xcc   :  { %v427_v44 = vpop.f32.mrf.mxu2  ;;  %v372_v52 = vpop.f32.mrf.mxu0 }
  0xcd   :  { %v2352_v45 = vadd.f32 %v427_v44, %v2347_v40  ;;  %v456_v51 = vpop.f32.mrf.mxu3  ;;  %v2357_v56 = vadd.f32 %v372_v52, %v166_v27  ;;  %v401_v57 = vpop.f32.mrf.mxu1 }
  0xce   :  { %v2355_v54 = vadd.f32 %v456_v51, %v2349_v43  ;;  %v2359_v58 = vadd.f32 %v401_v57, %v167_v29 }
  0xd4   :  { %v430_v62 = vpop.f32.mrf.mxu2  ;;  %v374_v5 = vpop.f32.mrf.mxu0 }
  0xd5   :  { %v2362_v63 = vadd.f32 %v430_v62, %v2347_v40  ;;  %v459_v0 = vpop.f32.mrf.mxu3  ;;  %v2367_v11 = vadd.f32 %v374_v5, %v166_v27  ;;  %v403_v12 = vpop.f32.mrf.mxu1 }
  0xd6   :  { %v2365_v6 = vadd.f32 %v459_v0, %v2349_v43  ;;  %v2369_v16 = vadd.f32 %v403_v12, %v167_v29 }
  0xd8   :  { %2647 = vst [vmem:[#allocation26_spill] sm:$0xff] %v2369_v16 }
  0xdc   :  { %v432_v17 = vpop.f32.mrf.mxu2  ;;  %v377_v25 = vpop.f32.mrf.mxu0 }
  0xdd   :  { %v2372_v18 = vadd.f32 %v432_v17, %v2347_v40  ;;  %v461_v19 = vpop.f32.mrf.mxu3  ;;  %v2377_v36 = vadd.f32 %v377_v25, %v166_v27  ;;  %v406_v44 = vpop.f32.mrf.mxu1 }
  0xde   :  { %v2375_v31 = vadd.f32 %v461_v19, %v2349_v43  ;;  %v2379_v51 = vadd.f32 %v406_v44, %v167_v29 }
  0xdf   :  { %2648 = vst [vmem:[#allocation27_spill] sm:$0xff] %v2372_v18 }
  0xe0   :  { %2649 = vst [vmem:[#allocation28_spill] sm:$0xff] %v2375_v31 }
  0xe1   :  { %2650 = vst [vmem:[#allocation29_spill] sm:$0xff] %v2377_v36 }
  0xe2   :  { %2651 = vst [vmem:[#allocation30_spill] sm:$0xff] %v2379_v51 }
  0xe4   :  { %v435_v52 = vpop.f32.mrf.mxu2  ;;  %v379_v0 = vpop.f32.mrf.mxu0 }
  0xe5   :  { %v2382_v57 = vadd.f32 %v435_v52, %v2347_v40  ;;  %v464_v62 = vpop.f32.mrf.mxu3  ;;  %v2387_v12 = vadd.f32 %v379_v0, %v166_v27  ;;  %v408_v17 = vpop.f32.mrf.mxu1 }
  0xe6   :  { %v2385_v5 = vadd.f32 %v464_v62, %v2349_v43  ;;  %v2389_v18 = vadd.f32 %v408_v17, %v167_v29 }
  0xe7   :  { %2652 = vst [vmem:[#allocation31_spill] sm:$0xff] %v2382_v57 }
  0xe8   :  { %2653 = vst [vmem:[#allocation32_spill] sm:$0xff] %v2385_v5 }
  0xe9   :  { %2654 = vst [vmem:[#allocation33_spill] sm:$0xff] %v2387_v12 }
  0xea   :  { %2655 = vst [vmem:[#allocation34_spill] sm:$0xff] %v2389_v18 }
  0xec   :  { %v437_v19 = vpop.f32.mrf.mxu2  ;;  %v382_v51 = vpop.f32.mrf.mxu0 }
  0xed   :  { %v2392_v25 = vadd.f32 %v437_v19, %v2347_v40  ;;  %v466_v44 = vpop.f32.mrf.mxu3  ;;  %v2397_v52 = vadd.f32 %v382_v51, %v166_v27  ;;  %v411_v57 = vpop.f32.mrf.mxu1 }
  0xee   :  { %v2395_v36 = vadd.f32 %v466_v44, %v2349_v43  ;;  %v2399_v31 = vadd.f32 %v411_v57, %v167_v29  ;;  %v368_v44 = vadd.f32 %v367_v23, %v166_v27  ;;  %v455_v23 = vadd.f32 %v2341_v30, %v2349_v43 }
  0xef   :  { %2656 = vst [vmem:[#allocation35_spill] sm:$0xff] %v2392_v25 }
  0xf0   :  { %2657 = vst [vmem:[#allocation36_spill] sm:$0xff] %v2395_v36 }
  0xf1   :  { %2658 = vst [vmem:[#allocation37_spill] sm:$0xff] %v2397_v52  ;;  %v397_v52 = vadd.f32 %v396_v24, %v167_v29 }
  0xf2   :  { %2659 = vst [vmem:[#allocation38_spill] sm:$0xff] %v2399_v31 }
  0xf4   :  { %v440_v62 = vpop.f32.mrf.mxu2  ;;  %v384_v18 = vpop.f32.mrf.mxu0 }
  0xf5   :  { %v2402_v0 = vadd.f32 %v440_v62, %v2347_v40  ;;  %v469_v17 = vpop.f32.mrf.mxu3  ;;  %v2407_v19 = vadd.f32 %v384_v18, %v166_v27  ;;  %v413_v25 = vpop.f32.mrf.mxu1 }
  0xf6   :  { %v2405_v12 = vadd.f32 %v469_v17, %v2349_v43  ;;  %v2409_v5 = vadd.f32 %v413_v25, %v167_v29  ;;  %v426_v25 = vadd.f32 %v2339_v28, %v2347_v40 }
  0xf7   :  { %2660 = vst [vmem:[#allocation39_spill] sm:$0xff] %v2402_v0 }
  0xf8   :  { %2661 = vst [vmem:[#allocation40_spill] sm:$0xff] %v2405_v12 }
  0xfc   :  { %v442_v51 = vpop.f32.mrf.mxu2  ;;  %v717_v36 = vpop.f32.mrf.mxu0 }
  0xfd   :  { %v2412_v57 = vadd.f32 %v442_v51, %v2347_v40  ;;  %v471_v31 = vpop.f32.mrf.mxu3  ;;  %v760_v0 = vadd.f32 %v717_v36, %v368_v44  ;;  %v730_v16 = vpop.f32.mrf.mxu1 }
  0xfe   :  { %v2415_v62 = vadd.f32 %v471_v31, %v2349_v43  ;;  %v761_v17 = vadd.f32 %v730_v16, %v397_v52 }
  0xff   :  { %2662 = vst [vmem:[#allocation41_spill] sm:$0xff] %v2412_v57  ;;  %v764_v12 = vmul.f32 0.5, %v760_v0  ;;  %v122_v0 = vld [vmem:[#allocation14] sm:$0xff] }
 0x100   :  { %2663 = vst [vmem:[#allocation42_spill] sm:$0xff] %v2415_v62  ;;  %v768_v18 = vmul.f32 0.5, %v761_v17 }
 0x101   :  { %1793 = vtanh.f32 %v764_v12 }
 0x102   :  { %1795 = vtanh.f32 %v768_v18 }
 0x104   :  { %v743_v24 = vpop.f32.mrf.mxu2  ;;  %v719_v51 = vpop.f32.mrf.mxu0 }
 0x105   :  { %v762_v27 = vadd.f32 %v743_v24, %v426_v25  ;;  %v756_v29 = vpop.f32.mrf.mxu3  ;;  %v732_v31 = vpop.f32.mrf.mxu1 }
 0x106   :  { %v763_v57 = vadd.f32 %v756_v29, %v455_v23 }
 0x107   :  { %1797 = vtanh.f32 %v762_v27  ;;  %v1794_v36 = vpop.eup %1793 }
 0x108   :  { %v773_v44 = vmul.f32 0.5, %v763_v57  ;;  %v1796_v16 = vpop.eup %1795  ;;  %v766_v52 = vmul.f32 0.5, %v1794_v36 }
 0x109   :  { %v770_v12 = vmul.f32 0.5, %v1796_v16 }
 0x10a   :  { %1799 = vtanh.f32 %v773_v44  ;;  %v767_v17 = vadd.f32 0.5, %v766_v52 }
 0x10b   :  { %v771_v28 = vadd.f32 0.5, %v770_v12 }
 0x10c   :  { %v745_v40 = vpop.f32.mrf.mxu2  ;;  %v777_v62 = vmul.f32 %v767_v17, %v122_v0 }
 0x10d   :  { %v1798_v18 = vpop.eup %1797  ;;  %v758_v30 = vpop.f32.mrf.mxu3 }
 0x10e   :  { %v778_v43 = vmul.f32 %v1798_v18, %v771_v28 }
 0x110   :  { %v1800_v25 = vpop.eup %1799  ;;  %v2421_v24 = vadd.f32 %v778_v43, %v777_v62 }
 0x111   :  { %v775_v23 = vmul.f32 0.5, %v1800_v25 }
 0x112   :  { %1801 = vtanh.f32 %v2421_v24 }
 0x113   :  { %v776_v27 = vadd.f32 0.5, %v775_v23 }
 0x118   :  { %v1802_v57 = vpop.eup %1801 }
 0x119   :  { %v781_v29 = vmul.f32 %v1802_v57, %v776_v27 }
 0x11b   :  { %782 = vst [vmem:[#allocation16] sm:$0xff] %v781_v29  ;;  %v790_v51 = vpack.c.bf16 %v781_v29, %v781_v29 }
 0x11d   :  { %799 = vmatmul.bf16.vlgmr.msra.gmra.mxu0 %v790_v51  ;;  %812 = vmatmul.bf16.vlgmr.msra.gmra.mxu1 %v790_v51 }
 0x11e   :  { %825 = vmatmul.bf16.vlgmr.msra.gmra.mxu2 %v790_v51  ;;  %838 = vmatmul.bf16.vlgmr.msra.gmra.mxu3 %v790_v51 }
 0x11f   :  { %959 = vmatpush.bf16.msra.mxu0 %v2179_v37  ;;  %972 = vmatpush.bf16.msra.mxu1 %v2181_v41 }
 0x120   :  { %985 = vmatpush.bf16.msra.mxu2 %v2183_v47  ;;  %998 = vmatpush.bf16.msra.mxu3 %v2186_v48 }
 0x123   :  { %960 = vmatpush.bf16.msra.mxu0 %v2188_v49  ;;  %973 = vmatpush.bf16.msra.mxu1 %v2191_v53 }
 0x124   :  { %986 = vmatpush.bf16.msra.mxu2 %v2194_v59  ;;  %999 = vmatpush.bf16.msra.mxu3 %v2198_v60 }
 0x127   :  { %961 = vmatpush.bf16.msra.mxu0 %v2200_v61  ;;  %974 = vmatpush.bf16.msra.mxu1 %v2203_v1 }
 0x128   :  { %987 = vmatpush.bf16.msra.mxu2 %v2206_v7  ;;  %1000 = vmatpush.bf16.msra.mxu3 %v2210_v8 }
 0x12b   :  { %962 = vmatpush.bf16.msra.mxu0 %v2212_v9  ;;  %975 = vmatpush.bf16.msra.mxu1 %v2215_v13 }
 0x12c   :  { %988 = vmatpush.bf16.msra.mxu2 %v2218_v20  ;;  %1001 = vmatpush.bf16.msra.mxu3 %v2222_v21 }
 0x12f   :  { %963 = vmatpush.bf16.msra.mxu0 %v2224_v22  ;;  %976 = vmatpush.bf16.msra.mxu1 %v2227_v26 }
 0x130   :  { %989 = vmatpush.bf16.msra.mxu2 %v2230_v32  ;;  %1002 = vmatpush.bf16.msra.mxu3 %v2234_v33 }
 0x133   :  { %964 = vmatpush.bf16.msra.mxu0 %v2236_v34  ;;  %977 = vmatpush.bf16.msra.mxu1 %v2239_v38 }
 0x134   :  { %990 = vmatpush.bf16.msra.mxu2 %v2242_v42  ;;  %1003 = vmatpush.bf16.msra.mxu3 %v2246_v46 }
 0x137   :  { %965 = vmatpush.bf16.msra.mxu0 %v2248_v50  ;;  %978 = vmatpush.bf16.msra.mxu1 %v2251_v55 }
 0x138   :  { %991 = vmatpush.bf16.msra.mxu2 %v2254_v2  ;;  %1004 = vmatpush.bf16.msra.mxu3 %v2258_v3 }
 0x13b   :  { %966 = vmatpush.bf16.msra.mxu0 %v2260_v4  ;;  %979 = vmatpush.bf16.msra.mxu1 %v2263_v10 }
 0x13c   :  { %992 = vmatpush.bf16.msra.mxu2 %v2266_v14  ;;  %1005 = vmatpush.bf16.msra.mxu3 %v2270_v15 }
 0x19a   :  { %v800_v62 = vpop.f32.mrf.mxu0  ;;  %v813_v31 = vpop.f32.mrf.mxu1 }
 0x19b   :  { %v843_v36 = vadd.f32 %v800_v62, %v2343_v35  ;;  %v844_v44 = vadd.f32 %v813_v31, %v2345_v39 }
 0x19d   :  { %v847_v16 = vmul.f32 0.5, %v843_v36  ;;  %v851_v52 = vmul.f32 0.5, %v844_v44 }
 0x19f   :  { %1803 = vtanh.f32 %v847_v16 }
 0x1a0   :  { %1805 = vtanh.f32 %v851_v52 }
 0x1a1   :  { %v826_v0 = vpop.f32.mrf.mxu2  ;;  %v839_v12 = vpop.f32.mrf.mxu3 }
 0x1a2   :  { %v845_v17 = vadd.f32 %v826_v0, %v2352_v45  ;;  %v846_v28 = vadd.f32 %v839_v12, %v2355_v54  ;;  %v802_v40 = vpop.f32.mrf.mxu0  ;;  %v815_v18 = vpop.f32.mrf.mxu1 }
 0x1a4   :  { %1807 = vtanh.f32 %v845_v17  ;;  %v856_v30 = vmul.f32 0.5, %v846_v28 }
 0x1a5   :  { %v1804_v43 = vpop.eup %1803 }
 0x1a6   :  { %v1806_v25 = vpop.eup %1805  ;;  %v849_v23 = vmul.f32 0.5, %v1804_v43  ;;  %1809 = vtanh.f32 %v856_v30 }
 0x1a7   :  { %v853_v35 = vmul.f32 0.5, %v1806_v25 }
 0x1a8   :  { %v850_v39 = vadd.f32 0.5, %v849_v23 }
 0x1a9   :  { %v854_v27 = vadd.f32 0.5, %v853_v35  ;;  %v828_v57 = vpop.f32.mrf.mxu2  ;;  %v841_v29 = vpop.f32.mrf.mxu3 }
 0x1aa   :  { %v1808_v51 = vpop.eup %1807  ;;  %v860_v62 = vmul.f32 %v850_v39, %v2421_v24 }
 0x1ab   :  { %v861_v31 = vmul.f32 %v1808_v51, %v854_v27 }
 0x1ac   :  { %v1810_v45 = vpop.eup %1809 }
 0x1ad   :  { %v2461_v36 = vadd.f32 %v861_v31, %v860_v62  ;;  %v858_v54 = vmul.f32 0.5, %v1810_v45 }
 0x1af   :  { %1811 = vtanh.f32 %v2461_v36  ;;  %v859_v44 = vadd.f32 0.5, %v858_v54 }
 0x1b5   :  { %v1812_v16 = vpop.eup %1811 }
 0x1b6   :  { %v864_v52 = vmul.f32 %v1812_v16, %v859_v44 }
 0x1b8   :  { %866 = vst [vmem:[#allocation16 + $0x8] sm:$0xff] %v864_v52  ;;  %v874_v0 = vpack.c.bf16 %v864_v52, %v864_v52 }
 0x1ba   :  { %883 = vmatmul.bf16.vlgmr.msrb.gmra.mxu0 %v874_v0  ;;  %896 = vmatmul.bf16.vlgmr.msrb.gmra.mxu1 %v874_v0 }
 0x1bb   :  { %909 = vmatmul.bf16.vlgmr.msrb.gmra.mxu2 %v874_v0  ;;  %922 = vmatmul.bf16.vlgmr.msrb.gmra.mxu3 %v874_v0 }
 0x1bc   :  { %1043 = vmatpush.bf16.msrb.mxu0 %v2179_v37  ;;  %1056 = vmatpush.bf16.msrb.mxu1 %v2181_v41 }
 0x1bd   :  { %1069 = vmatpush.bf16.msrb.mxu2 %v2183_v47  ;;  %1082 = vmatpush.bf16.msrb.mxu3 %v2186_v48 }
 0x1c0   :  { %1044 = vmatpush.bf16.msrb.mxu0 %v2188_v49  ;;  %1057 = vmatpush.bf16.msrb.mxu1 %v2191_v53 }
 0x1c1   :  { %1070 = vmatpush.bf16.msrb.mxu2 %v2194_v59  ;;  %1083 = vmatpush.bf16.msrb.mxu3 %v2198_v60 }
 0x1c4   :  { %1045 = vmatpush.bf16.msrb.mxu0 %v2200_v61  ;;  %1058 = vmatpush.bf16.msrb.mxu1 %v2203_v1 }
 0x1c5   :  { %1071 = vmatpush.bf16.msrb.mxu2 %v2206_v7  ;;  %1084 = vmatpush.bf16.msrb.mxu3 %v2210_v8 }
 0x1c8   :  { %1046 = vmatpush.bf16.msrb.mxu0 %v2212_v9  ;;  %1059 = vmatpush.bf16.msrb.mxu1 %v2215_v13 }
 0x1c9   :  { %1072 = vmatpush.bf16.msrb.mxu2 %v2218_v20  ;;  %1085 = vmatpush.bf16.msrb.mxu3 %v2222_v21 }
 0x1cc   :  { %1047 = vmatpush.bf16.msrb.mxu0 %v2224_v22  ;;  %1060 = vmatpush.bf16.msrb.mxu1 %v2227_v26 }
 0x1cd   :  { %1073 = vmatpush.bf16.msrb.mxu2 %v2230_v32  ;;  %1086 = vmatpush.bf16.msrb.mxu3 %v2234_v33 }
 0x1d0   :  { %1048 = vmatpush.bf16.msrb.mxu0 %v2236_v34  ;;  %1061 = vmatpush.bf16.msrb.mxu1 %v2239_v38 }
 0x1d1   :  { %1074 = vmatpush.bf16.msrb.mxu2 %v2242_v42  ;;  %1087 = vmatpush.bf16.msrb.mxu3 %v2246_v46 }
 0x1d4   :  { %1049 = vmatpush.bf16.msrb.mxu0 %v2248_v50  ;;  %1062 = vmatpush.bf16.msrb.mxu1 %v2251_v55 }
 0x1d5   :  { %1075 = vmatpush.bf16.msrb.mxu2 %v2254_v2  ;;  %1088 = vmatpush.bf16.msrb.mxu3 %v2258_v3 }
 0x1d8   :  { %1050 = vmatpush.bf16.msrb.mxu0 %v2260_v4  ;;  %1063 = vmatpush.bf16.msrb.mxu1 %v2263_v10 }
 0x1d9   :  { %1076 = vmatpush.bf16.msrb.mxu2 %v2266_v14  ;;  %1089 = vmatpush.bf16.msrb.mxu3 %v2270_v15 }
 0x237   :  { %v884_v24 = vpop.f32.mrf.mxu0  ;;  %v897_v12 = vpop.f32.mrf.mxu1 }
 0x238   :  { %v927_v17 = vadd.f32 %v884_v24, %v2357_v56  ;;  %v928_v28 = vadd.f32 %v897_v12, %v2359_v58 }
 0x23a   :  { %v931_v40 = vmul.f32 0.5, %v927_v17  ;;  %v935_v18 = vmul.f32 0.5, %v928_v28 }
 0x23c   :  { %1813 = vtanh.f32 %v931_v40 }
 0x23d   :  { %1815 = vtanh.f32 %v935_v18  ;;  %v2664_v18 = vld [vmem:[#allocation26_spill] sm:$0xff] }
 0x23e   :  { %v910_v30 = vpop.f32.mrf.mxu2  ;;  %v923_v43 = vpop.f32.mrf.mxu3 }
 0x23f   :  { %v929_v25 = vadd.f32 %v910_v30, %v2362_v63  ;;  %v930_v23 = vadd.f32 %v923_v43, %v2365_v6  ;;  %v886_v35 = vpop.f32.mrf.mxu0  ;;  %v899_v39 = vpop.f32.mrf.mxu1 }
 0x240   :  { %v2665_v39 = vld [vmem:[#allocation27_spill] sm:$0xff] }
 0x241   :  { %1817 = vtanh.f32 %v929_v25  ;;  %v940_v27 = vmul.f32 0.5, %v930_v23 }
 0x242   :  { %v1814_v57 = vpop.eup %1813 }
 0x243   :  { %v1816_v29 = vpop.eup %1815  ;;  %v933_v51 = vmul.f32 0.5, %v1814_v57  ;;  %1819 = vtanh.f32 %v940_v27  ;;  %v2666_v57 = vld [vmem:[#allocation28_spill] sm:$0xff] }
 0x244   :  { %v937_v56 = vmul.f32 0.5, %v1816_v29 }
 0x245   :  { %v934_v58 = vadd.f32 0.5, %v933_v51 }
 0x246   :  { %v938_v62 = vadd.f32 0.5, %v937_v56  ;;  %v912_v31 = vpop.f32.mrf.mxu2  ;;  %v925_v45 = vpop.f32.mrf.mxu3 }
 0x247   :  { %v1818_v54 = vpop.eup %1817  ;;  %v944_v44 = vmul.f32 %v934_v58, %v2461_v36 }
 0x248   :  { %v945_v16 = vmul.f32 %v1818_v54, %v938_v62 }
 0x249   :  { %v1820_v63 = vpop.eup %1819 }
 0x24a   :  { %v2501_v52 = vadd.f32 %v945_v16, %v944_v44  ;;  %v942_v6 = vmul.f32 0.5, %v1820_v63 }
 0x24c   :  { %1821 = vtanh.f32 %v2501_v52  ;;  %v943_v0 = vadd.f32 0.5, %v942_v6 }
 0x252   :  { %v1822_v24 = vpop.eup %1821 }
 0x253   :  { %v948_v12 = vmul.f32 %v1822_v24, %v943_v0 }
 0x255   :  { %950 = vst [vmem:[#allocation16 + $0x10] sm:$0xff] %v948_v12  ;;  %v958_v17 = vpack.c.bf16 %v948_v12, %v948_v12 }
 0x257   :  { %967 = vmatmul.bf16.vlgmr.msra.gmra.mxu0 %v958_v17  ;;  %980 = vmatmul.bf16.vlgmr.msra.gmra.mxu1 %v958_v17 }
 0x258   :  { %993 = vmatmul.bf16.vlgmr.msra.gmra.mxu2 %v958_v17  ;;  %1006 = vmatmul.bf16.vlgmr.msra.gmra.mxu3 %v958_v17 }
 0x259   :  { %1127 = vmatpush.bf16.msra.mxu0 %v2179_v37  ;;  %1140 = vmatpush.bf16.msra.mxu1 %v2181_v41 }
 0x25a   :  { %1153 = vmatpush.bf16.msra.mxu2 %v2183_v47  ;;  %1166 = vmatpush.bf16.msra.mxu3 %v2186_v48 }
 0x25d   :  { %1128 = vmatpush.bf16.msra.mxu0 %v2188_v49  ;;  %1141 = vmatpush.bf16.msra.mxu1 %v2191_v53 }
 0x25e   :  { %1154 = vmatpush.bf16.msra.mxu2 %v2194_v59  ;;  %1167 = vmatpush.bf16.msra.mxu3 %v2198_v60 }
 0x261   :  { %1129 = vmatpush.bf16.msra.mxu0 %v2200_v61  ;;  %1142 = vmatpush.bf16.msra.mxu1 %v2203_v1 }
 0x262   :  { %1155 = vmatpush.bf16.msra.mxu2 %v2206_v7  ;;  %1168 = vmatpush.bf16.msra.mxu3 %v2210_v8 }
 0x265   :  { %1130 = vmatpush.bf16.msra.mxu0 %v2212_v9  ;;  %1143 = vmatpush.bf16.msra.mxu1 %v2215_v13 }
 0x266   :  { %1156 = vmatpush.bf16.msra.mxu2 %v2218_v20  ;;  %1169 = vmatpush.bf16.msra.mxu3 %v2222_v21 }
 0x269   :  { %1131 = vmatpush.bf16.msra.mxu0 %v2224_v22  ;;  %1144 = vmatpush.bf16.msra.mxu1 %v2227_v26 }
 0x26a   :  { %1157 = vmatpush.bf16.msra.mxu2 %v2230_v32  ;;  %1170 = vmatpush.bf16.msra.mxu3 %v2234_v33 }
 0x26d   :  { %1132 = vmatpush.bf16.msra.mxu0 %v2236_v34  ;;  %1145 = vmatpush.bf16.msra.mxu1 %v2239_v38 }
 0x26e   :  { %1158 = vmatpush.bf16.msra.mxu2 %v2242_v42  ;;  %1171 = vmatpush.bf16.msra.mxu3 %v2246_v46 }
 0x271   :  { %1133 = vmatpush.bf16.msra.mxu0 %v2248_v50  ;;  %1146 = vmatpush.bf16.msra.mxu1 %v2251_v55 }
 0x272   :  { %1159 = vmatpush.bf16.msra.mxu2 %v2254_v2  ;;  %1172 = vmatpush.bf16.msra.mxu3 %v2258_v3 }
 0x275   :  { %1134 = vmatpush.bf16.msra.mxu0 %v2260_v4  ;;  %1147 = vmatpush.bf16.msra.mxu1 %v2263_v10 }
 0x276   :  { %1160 = vmatpush.bf16.msra.mxu2 %v2266_v14  ;;  %1173 = vmatpush.bf16.msra.mxu3 %v2270_v15 }
 0x2d4   :  { %v968_v36 = vpop.f32.mrf.mxu0  ;;  %v981_v28 = vpop.f32.mrf.mxu1 }
 0x2d5   :  { %v1011_v40 = vadd.f32 %v968_v36, %v2367_v11  ;;  %v1012_v30 = vadd.f32 %v981_v28, %v2664_v18 }
 0x2d7   :  { %v1015_v43 = vmul.f32 0.5, %v1011_v40  ;;  %v1019_v25 = vmul.f32 0.5, %v1012_v30 }
 0x2d9   :  { %1823 = vtanh.f32 %v1015_v43 }
 0x2da   :  { %1825 = vtanh.f32 %v1019_v25  ;;  %v2667_v25 = vld [vmem:[#allocation29_spill] sm:$0xff] }
 0x2db   :  { %v994_v23 = vpop.f32.mrf.mxu2  ;;  %v1007_v35 = vpop.f32.mrf.mxu3 }
 0x2dc   :  { %v1013_v27 = vadd.f32 %v994_v23, %v2665_v39  ;;  %v1014_v29 = vadd.f32 %v1007_v35, %v2666_v57  ;;  %v970_v51 = vpop.f32.mrf.mxu0  ;;  %v983_v56 = vpop.f32.mrf.mxu1  ;;  %v2668_v35 = vld [vmem:[#allocation30_spill] sm:$0xff] }
 0x2dd   :  { %v2669_v56 = vld [vmem:[#allocation31_spill] sm:$0xff] }
 0x2de   :  { %1827 = vtanh.f32 %v1013_v27  ;;  %v1024_v58 = vmul.f32 0.5, %v1014_v29 }
 0x2df   :  { %v1824_v62 = vpop.eup %1823 }
 0x2e0   :  { %v1826_v31 = vpop.eup %1825  ;;  %v1017_v45 = vmul.f32 0.5, %v1824_v62  ;;  %1829 = vtanh.f32 %v1024_v58  ;;  %v2670_v62 = vld [vmem:[#allocation32_spill] sm:$0xff] }
 0x2e1   :  { %v1021_v11 = vmul.f32 0.5, %v1826_v31 }
 0x2e2   :  { %v1018_v54 = vadd.f32 0.5, %v1017_v45 }
 0x2e3   :  { %v1022_v44 = vadd.f32 0.5, %v1021_v11  ;;  %v996_v16 = vpop.f32.mrf.mxu2  ;;  %v1009_v63 = vpop.f32.mrf.mxu3 }
 0x2e4   :  { %v1828_v6 = vpop.eup %1827  ;;  %v1028_v0 = vmul.f32 %v1018_v54, %v2501_v52 }
 0x2e5   :  { %v1029_v24 = vmul.f32 %v1828_v6, %v1022_v44 }
 0x2e6   :  { %v1830_v12 = vpop.eup %1829 }
 0x2e7   :  { %v2541_v17 = vadd.f32 %v1029_v24, %v1028_v0  ;;  %v1026_v36 = vmul.f32 0.5, %v1830_v12 }
 0x2e9   :  { %1831 = vtanh.f32 %v2541_v17  ;;  %v1027_v28 = vadd.f32 0.5, %v1026_v36 }
 0x2ef   :  { %v1832_v40 = vpop.eup %1831 }
 0x2f0   :  { %v1032_v18 = vmul.f32 %v1832_v40, %v1027_v28 }
 0x2f2   :  { %1034 = vst [vmem:[#allocation16 + $0x18] sm:$0xff] %v1032_v18  ;;  %v1042_v30 = vpack.c.bf16 %v1032_v18, %v1032_v18 }
 0x2f4   :  { %1051 = vmatmul.bf16.vlgmr.msrb.gmra.mxu0 %v1042_v30  ;;  %1064 = vmatmul.bf16.vlgmr.msrb.gmra.mxu1 %v1042_v30 }
 0x2f5   :  { %1077 = vmatmul.bf16.vlgmr.msrb.gmra.mxu2 %v1042_v30  ;;  %1090 = vmatmul.bf16.vlgmr.msrb.gmra.mxu3 %v1042_v30 }
 0x2f6   :  { %1211 = vmatpush.bf16.msrb.mxu0 %v2179_v37  ;;  %1224 = vmatpush.bf16.msrb.mxu1 %v2181_v41 }
 0x2f7   :  { %1237 = vmatpush.bf16.msrb.mxu2 %v2183_v47  ;;  %1250 = vmatpush.bf16.msrb.mxu3 %v2186_v48 }
 0x2fa   :  { %1212 = vmatpush.bf16.msrb.mxu0 %v2188_v49  ;;  %1225 = vmatpush.bf16.msrb.mxu1 %v2191_v53 }
 0x2fb   :  { %1238 = vmatpush.bf16.msrb.mxu2 %v2194_v59  ;;  %1251 = vmatpush.bf16.msrb.mxu3 %v2198_v60 }
 0x2fe   :  { %1213 = vmatpush.bf16.msrb.mxu0 %v2200_v61  ;;  %1226 = vmatpush.bf16.msrb.mxu1 %v2203_v1 }
 0x2ff   :  { %1239 = vmatpush.bf16.msrb.mxu2 %v2206_v7  ;;  %1252 = vmatpush.bf16.msrb.mxu3 %v2210_v8 }
 0x302   :  { %1214 = vmatpush.bf16.msrb.mxu0 %v2212_v9  ;;  %1227 = vmatpush.bf16.msrb.mxu1 %v2215_v13 }
 0x303   :  { %1240 = vmatpush.bf16.msrb.mxu2 %v2218_v20  ;;  %1253 = vmatpush.bf16.msrb.mxu3 %v2222_v21 }
 0x306   :  { %1215 = vmatpush.bf16.msrb.mxu0 %v2224_v22  ;;  %1228 = vmatpush.bf16.msrb.mxu1 %v2227_v26 }
 0x307   :  { %1241 = vmatpush.bf16.msrb.mxu2 %v2230_v32  ;;  %1254 = vmatpush.bf16.msrb.mxu3 %v2234_v33 }
 0x30a   :  { %1216 = vmatpush.bf16.msrb.mxu0 %v2236_v34  ;;  %1229 = vmatpush.bf16.msrb.mxu1 %v2239_v38 }
 0x30b   :  { %1242 = vmatpush.bf16.msrb.mxu2 %v2242_v42  ;;  %1255 = vmatpush.bf16.msrb.mxu3 %v2246_v46 }
 0x30e   :  { %1217 = vmatpush.bf16.msrb.mxu0 %v2248_v50  ;;  %1230 = vmatpush.bf16.msrb.mxu1 %v2251_v55 }
 0x30f   :  { %1243 = vmatpush.bf16.msrb.mxu2 %v2254_v2  ;;  %1256 = vmatpush.bf16.msrb.mxu3 %v2258_v3 }
 0x312   :  { %1218 = vmatpush.bf16.msrb.mxu0 %v2260_v4  ;;  %1231 = vmatpush.bf16.msrb.mxu1 %v2263_v10 }
 0x313   :  { %1244 = vmatpush.bf16.msrb.mxu2 %v2266_v14  ;;  %1257 = vmatpush.bf16.msrb.mxu3 %v2270_v15 }
 0x371   :  { %v1052_v52 = vpop.f32.mrf.mxu0  ;;  %v1065_v43 = vpop.f32.mrf.mxu1 }
 0x372   :  { %v1095_v23 = vadd.f32 %v1052_v52, %v2667_v25  ;;  %v1096_v39 = vadd.f32 %v1065_v43, %v2668_v35 }
 0x374   :  { %v1099_v27 = vmul.f32 0.5, %v1095_v23  ;;  %v1103_v57 = vmul.f32 0.5, %v1096_v39 }
 0x376   :  { %1833 = vtanh.f32 %v1099_v27 }
 0x377   :  { %1835 = vtanh.f32 %v1103_v57 }
 0x378   :  { %v1078_v29 = vpop.f32.mrf.mxu2  ;;  %v1091_v51 = vpop.f32.mrf.mxu3 }
 0x379   :  { %v1097_v58 = vadd.f32 %v1078_v29, %v2669_v56  ;;  %v1098_v31 = vadd.f32 %v1091_v51, %v2670_v62  ;;  %v1054_v45 = vpop.f32.mrf.mxu0  ;;  %v1067_v11 = vpop.f32.mrf.mxu1  ;;  %v2675_v56 = vld [vmem:[#allocation37_spill] sm:$0xff]  ;;  %v2676_v62 = vld [vmem:[#allocation38_spill] sm:$0xff] }
 0x37b   :  { %1837 = vtanh.f32 %v1097_v58  ;;  %v1108_v54 = vmul.f32 0.5, %v1098_v31 }
 0x37c   :  { %v1834_v44 = vpop.eup %1833 }
 0x37d   :  { %v1836_v16 = vpop.eup %1835  ;;  %v1101_v63 = vmul.f32 0.5, %v1834_v44  ;;  %1839 = vtanh.f32 %v1108_v54 }
 0x37e   :  { %v1105_v6 = vmul.f32 0.5, %v1836_v16  ;;  %v2677_v16 = vld [vmem:[#allocation39_spill] sm:$0xff] }
 0x37f   :  { %v1102_v0 = vadd.f32 0.5, %v1101_v63 }
 0x380   :  { %v1106_v24 = vadd.f32 0.5, %v1105_v6  ;;  %v1080_v12 = vpop.f32.mrf.mxu2  ;;  %v1093_v36 = vpop.f32.mrf.mxu3  ;;  %v2678_v6 = vld [vmem:[#allocation40_spill] sm:$0xff] }
 0x381   :  { %v1838_v28 = vpop.eup %1837  ;;  %v1112_v40 = vmul.f32 %v1102_v0, %v2541_v17 }
 0x382   :  { %v1113_v18 = vmul.f32 %v1838_v28, %v1106_v24 }
 0x383   :  { %v1840_v30 = vpop.eup %1839 }
 0x384   :  { %v2581_v52 = vadd.f32 %v1113_v18, %v1112_v40  ;;  %v1110_v43 = vmul.f32 0.5, %v1840_v30 }
 0x386   :  { %1841 = vtanh.f32 %v2581_v52  ;;  %v1111_v25 = vadd.f32 0.5, %v1110_v43 }
 0x38c   :  { %v1842_v23 = vpop.eup %1841 }
 0x38d   :  { %v1116_v35 = vmul.f32 %v1842_v23, %v1111_v25 }
 0x38f   :  { %1118 = vst [vmem:[#allocation16 + $0x20] sm:$0xff] %v1116_v35  ;;  %v1126_v39 = vpack.c.bf16 %v1116_v35, %v1116_v35 }
 0x391   :  { %1135 = vmatmul.bf16.vlgmr.msra.gmra.mxu0 %v1126_v39  ;;  %1148 = vmatmul.bf16.vlgmr.msra.gmra.mxu1 %v1126_v39 }
 0x392   :  { %1161 = vmatmul.bf16.vlgmr.msra.gmra.mxu2 %v1126_v39  ;;  %1174 = vmatmul.bf16.vlgmr.msra.gmra.mxu3 %v1126_v39 }
 0x393   :  { %1295 = vmatpush.bf16.msra.mxu0 %v2179_v37  ;;  %1308 = vmatpush.bf16.msra.mxu1 %v2181_v41 }
 0x394   :  { %1321 = vmatpush.bf16.msra.mxu2 %v2183_v47  ;;  %1334 = vmatpush.bf16.msra.mxu3 %v2186_v48  ;;  %v2671_v47 = vld [vmem:[#allocation33_spill] sm:$0xff] }
 0x397   :  { %1296 = vmatpush.bf16.msra.mxu0 %v2188_v49  ;;  %1309 = vmatpush.bf16.msra.mxu1 %v2191_v53  ;;  %v2672_v49 = vld [vmem:[#allocation34_spill] sm:$0xff] }
 0x398   :  { %1322 = vmatpush.bf16.msra.mxu2 %v2194_v59  ;;  %1335 = vmatpush.bf16.msra.mxu3 %v2198_v60 }
 0x39b   :  { %1297 = vmatpush.bf16.msra.mxu0 %v2200_v61  ;;  %1310 = vmatpush.bf16.msra.mxu1 %v2203_v1 }
 0x39c   :  { %1323 = vmatpush.bf16.msra.mxu2 %v2206_v7  ;;  %1336 = vmatpush.bf16.msra.mxu3 %v2210_v8  ;;  %v2673_v7 = vld [vmem:[#allocation35_spill] sm:$0xff] }
 0x39f   :  { %1298 = vmatpush.bf16.msra.mxu0 %v2212_v9  ;;  %1311 = vmatpush.bf16.msra.mxu1 %v2215_v13  ;;  %v2674_v9 = vld [vmem:[#allocation36_spill] sm:$0xff] }
 0x3a0   :  { %1324 = vmatpush.bf16.msra.mxu2 %v2218_v20  ;;  %1337 = vmatpush.bf16.msra.mxu3 %v2222_v21 }
 0x3a3   :  { %1299 = vmatpush.bf16.msra.mxu0 %v2224_v22  ;;  %1312 = vmatpush.bf16.msra.mxu1 %v2227_v26 }
 0x3a4   :  { %1325 = vmatpush.bf16.msra.mxu2 %v2230_v32  ;;  %1338 = vmatpush.bf16.msra.mxu3 %v2234_v33 }
 0x3a7   :  { %1300 = vmatpush.bf16.msra.mxu0 %v2236_v34  ;;  %1313 = vmatpush.bf16.msra.mxu1 %v2239_v38 }
 0x3a8   :  { %1326 = vmatpush.bf16.msra.mxu2 %v2242_v42  ;;  %1339 = vmatpush.bf16.msra.mxu3 %v2246_v46 }
 0x3ab   :  { %1301 = vmatpush.bf16.msra.mxu0 %v2248_v50  ;;  %1314 = vmatpush.bf16.msra.mxu1 %v2251_v55 }
 0x3ac   :  { %1327 = vmatpush.bf16.msra.mxu2 %v2254_v2  ;;  %1340 = vmatpush.bf16.msra.mxu3 %v2258_v3 }
 0x3af   :  { %1302 = vmatpush.bf16.msra.mxu0 %v2260_v4  ;;  %1315 = vmatpush.bf16.msra.mxu1 %v2263_v10 }
 0x3b0   :  { %1328 = vmatpush.bf16.msra.mxu2 %v2266_v14  ;;  %1341 = vmatpush.bf16.msra.mxu3 %v2270_v15 }
 0x40e   :  { %v1136_v37 = vpop.f32.mrf.mxu0  ;;  %v1149_v41 = vpop.f32.mrf.mxu1 }
 0x40f   :  { %v1179_v48 = vadd.f32 %v1136_v37, %v2671_v47  ;;  %v1180_v53 = vadd.f32 %v1149_v41, %v2672_v49 }
 0x411   :  { %v1183_v59 = vmul.f32 0.5, %v1179_v48  ;;  %v1187_v60 = vmul.f32 0.5, %v1180_v53 }
 0x413   :  { %1843 = vtanh.f32 %v1183_v59 }
 0x414   :  { %1845 = vtanh.f32 %v1187_v60 }
 0x415   :  { %v1162_v61 = vpop.f32.mrf.mxu2  ;;  %v1175_v1 = vpop.f32.mrf.mxu3 }
 0x416   :  { %v1181_v8 = vadd.f32 %v1162_v61, %v2673_v7  ;;  %v1182_v13 = vadd.f32 %v1175_v1, %v2674_v9  ;;  %v1138_v20 = vpop.f32.mrf.mxu0  ;;  %v1151_v21 = vpop.f32.mrf.mxu1 }
 0x418   :  { %1847 = vtanh.f32 %v1181_v8  ;;  %v1192_v22 = vmul.f32 0.5, %v1182_v13 }
 0x419   :  { %v1844_v26 = vpop.eup %1843 }
 0x41a   :  { %v1846_v32 = vpop.eup %1845  ;;  %v1185_v33 = vmul.f32 0.5, %v1844_v26  ;;  %1849 = vtanh.f32 %v1192_v22  ;;  %v2679_v22 = vld [vmem:[#allocation41_spill] sm:$0xff] }
 0x41b   :  { %v1189_v34 = vmul.f32 0.5, %v1846_v32  ;;  %v2680_v32 = vld [vmem:[#allocation42_spill] sm:$0xff] }
 0x41c   :  { %v1186_v38 = vadd.f32 0.5, %v1185_v33 }
 0x41d   :  { %v1190_v42 = vadd.f32 0.5, %v1189_v34  ;;  %v1164_v46 = vpop.f32.mrf.mxu2  ;;  %v1177_v50 = vpop.f32.mrf.mxu3 }
 0x41e   :  { %v1848_v55 = vpop.eup %1847  ;;  %v1196_v2 = vmul.f32 %v1186_v38, %v2581_v52 }
 0x41f   :  { %v1197_v3 = vmul.f32 %v1848_v55, %v1190_v42 }
 0x420   :  { %v1850_v4 = vpop.eup %1849 }
 0x421   :  { %v1198_v10 = vadd.f32 %v1197_v3, %v1196_v2  ;;  %v1194_v14 = vmul.f32 0.5, %v1850_v4 }
 0x423   :  { %1851 = vtanh.f32 %v1198_v10  ;;  %v1195_v15 = vadd.f32 0.5, %v1194_v14 }
 0x429   :  { %v1852_v17 = vpop.eup %1851 }
 0x42a   :  { %v1200_v27 = vmul.f32 %v1852_v17, %v1195_v15 }
 0x42c   :  { %1202 = vst [vmem:[#allocation16 + $0x28] sm:$0xff] %v1200_v27  ;;  %v1210_v57 = vpack.c.bf16 %v1200_v27, %v1200_v27 }
 0x42e   :  { %1219 = vmatmul.bf16.vlgmr.msrb.gmra.mxu0 %v1210_v57  ;;  %1232 = vmatmul.bf16.vlgmr.msrb.gmra.mxu1 %v1210_v57 }
 0x42f   :  { %1245 = vmatmul.bf16.vlgmr.msrb.gmra.mxu2 %v1210_v57  ;;  %1258 = vmatmul.bf16.vlgmr.msrb.gmra.mxu3 %v1210_v57 }
 0x4ab   :  { %v1220_v29 = vpop.f32.mrf.mxu0  ;;  %v1233_v51 = vpop.f32.mrf.mxu1 }
 0x4ac   :  { %v1263_v58 = vadd.f32 %v1220_v29, %v2675_v56  ;;  %v1264_v31 = vadd.f32 %v1233_v51, %v2676_v62 }
 0x4ae   :  { %v1267_v45 = vmul.f32 0.5, %v1263_v58  ;;  %v1271_v11 = vmul.f32 0.5, %v1264_v31 }
 0x4b0   :  { %1853 = vtanh.f32 %v1267_v45 }
 0x4b1   :  { %1855 = vtanh.f32 %v1271_v11 }
 0x4b2   :  { %v1246_v54 = vpop.f32.mrf.mxu2  ;;  %v1259_v44 = vpop.f32.mrf.mxu3 }
 0x4b3   :  { %v1265_v63 = vadd.f32 %v1246_v54, %v2677_v16  ;;  %v1266_v0 = vadd.f32 %v1259_v44, %v2678_v6  ;;  %v1222_v24 = vpop.f32.mrf.mxu0  ;;  %v1235_v12 = vpop.f32.mrf.mxu1 }
 0x4b5   :  { %1857 = vtanh.f32 %v1265_v63  ;;  %v1276_v36 = vmul.f32 0.5, %v1266_v0 }
 0x4b6   :  { %v1854_v28 = vpop.eup %1853 }
 0x4b7   :  { %v1856_v40 = vpop.eup %1855  ;;  %v1269_v18 = vmul.f32 0.5, %v1854_v28  ;;  %1859 = vtanh.f32 %v1276_v36 }
 0x4b8   :  { %v1273_v30 = vmul.f32 0.5, %v1856_v40 }
 0x4b9   :  { %v1270_v52 = vadd.f32 0.5, %v1269_v18 }
 0x4ba   :  { %v1274_v43 = vadd.f32 0.5, %v1273_v30  ;;  %v1248_v25 = vpop.f32.mrf.mxu2  ;;  %v1261_v23 = vpop.f32.mrf.mxu3 }
 0x4bb   :  { %v1858_v35 = vpop.eup %1857  ;;  %v1280_v39 = vmul.f32 %v1270_v52, %v1198_v10 }
 0x4bc   :  { %v1281_v37 = vmul.f32 %v1858_v35, %v1274_v43 }
 0x4bd   :  { %v1860_v41 = vpop.eup %1859 }
 0x4be   :  { %v1282_v47 = vadd.f32 %v1281_v37, %v1280_v39  ;;  %v1278_v48 = vmul.f32 0.5, %v1860_v41 }
 0x4c0   :  { %1861 = vtanh.f32 %v1282_v47  ;;  %v1279_v49 = vadd.f32 0.5, %v1278_v48 }
 0x4c6   :  { %v1862_v53 = vpop.eup %1861 }
 0x4c7   :  { %v1284_v59 = vmul.f32 %v1862_v53, %v1279_v49 }
 0x4c9   :  { %1286 = vst [vmem:[#allocation16 + $0x30] sm:$0xff] %v1284_v59  ;;  %v1294_v60 = vpack.c.bf16 %v1284_v59, %v1284_v59 }
 0x4cb   :  { %1303 = vmatmul.bf16.vlgmr.msra.gmra.mxu0 %v1294_v60  ;;  %1316 = vmatmul.bf16.vlgmr.msra.gmra.mxu1 %v1294_v60 }
 0x4cc   :  { %1329 = vmatmul.bf16.vlgmr.msra.gmra.mxu2 %v1294_v60  ;;  %1342 = vmatmul.bf16.vlgmr.msra.gmra.mxu3 %v1294_v60 }
 0x548   :  { %v1304_v61 = vpop.f32.mrf.mxu0  ;;  %v1317_v1 = vpop.f32.mrf.mxu1 }
 0x549   :  { %v1347_v7 = vadd.f32 %v1304_v61, %v2407_v19  ;;  %v1348_v8 = vadd.f32 %v1317_v1, %v2409_v5 }
 0x54b   :  { %v1351_v9 = vmul.f32 0.5, %v1347_v7  ;;  %v1355_v13 = vmul.f32 0.5, %v1348_v8 }
 0x54d   :  { %1863 = vtanh.f32 %v1351_v9 }
 0x54e   :  { %1865 = vtanh.f32 %v1355_v13 }
 0x54f   :  { %v1330_v20 = vpop.f32.mrf.mxu2  ;;  %v1343_v21 = vpop.f32.mrf.mxu3 }
 0x550   :  { %v1349_v26 = vadd.f32 %v1330_v20, %v2679_v22  ;;  %v1350_v33 = vadd.f32 %v1343_v21, %v2680_v32  ;;  %v1306_v34 = vpop.f32.mrf.mxu0  ;;  %v1319_v38 = vpop.f32.mrf.mxu1 }
 0x552   :  { %1867 = vtanh.f32 %v1349_v26  ;;  %v1360_v42 = vmul.f32 0.5, %v1350_v33 }
 0x553   :  { %v1864_v46 = vpop.eup %1863 }
 0x554   :  { %v1866_v50 = vpop.eup %1865  ;;  %v1353_v55 = vmul.f32 0.5, %v1864_v46  ;;  %1869 = vtanh.f32 %v1360_v42 }
 0x555   :  { %v1357_v19 = vmul.f32 0.5, %v1866_v50 }
 0x556   :  { %v1354_v5 = vadd.f32 0.5, %v1353_v55 }
 0x557   :  { %v1358_v2 = vadd.f32 0.5, %v1357_v19  ;;  %v1332_v3 = vpop.f32.mrf.mxu2  ;;  %v1345_v4 = vpop.f32.mrf.mxu3 }
 0x558   :  { %v1868_v10 = vpop.eup %1867  ;;  %v1364_v14 = vmul.f32 %v1354_v5, %v1282_v47 }
 0x559   :  { %v1365_v15 = vmul.f32 %v1868_v10, %v1358_v2 }
 0x55a   :  { %v1870_v17 = vpop.eup %1869 }
 0x55b   :  { %v1366_v27 = vadd.f32 %v1365_v15, %v1364_v14  ;;  %v1362_v57 = vmul.f32 0.5, %v1870_v17 }
 0x55d   :  { %1871 = vtanh.f32 %v1366_v27  ;;  %1377 = vst [vmem:[#allocation19] sm:$0xff] %v1366_v27  ;;  %v1363_v29 = vadd.f32 0.5, %v1362_v57 }
 0x563   :  { %v1872_v51 = vpop.eup %1871 }
 0x564   :  { %v1368_v56 = vmul.f32 %v1872_v51, %v1363_v29 }
 0x566   :  { %1370 = vst [vmem:[#allocation16 + $0x38] sm:$0xff] %v1368_v56 }
 0x567   :  { %1376 = vst [vmem:[#allocation17] sm:$0xff] %v1368_v56  ;;  %1390 = dma.vmem_to_hbm [thread:$0]  %s1383_s5, 1024, %s1385_s15, [#allocation7], %s2114_s6, %s2114_s6, %s2115_s24  }
 0x568   :  { %1401 = dma.vmem_to_hbm [thread:$0]  %s1397_s17, 128, %s1399_s1, [#allocation18]  }
 0x569   :  { %1412 = dma.vmem_to_hbm [thread:$0]  %s1408_s21, 128, %s1410_s23, [#allocation18]  }
 0x56a   :  { %2097 = dma.done.wait [#allocation7], 1024  }
 0x56b   :  { %2098 = vsyncadd [#allocation7], 4294966272 }
 0x56c   :  { %2099 = dma.done.wait [#allocation18], 256  }
 0x56d   :  { %2100 = vsyncadd [#allocation18], 4294967040 }
 0x56e   :  { %1425 = vsyncpa [#allocation6], 1 }
 0x56f   :  { %1426 = vsyncpa [#allocation9], 1 }
 0x570   :  { %1427 = vsyncpa [#allocation12], 1 }
 0x571   :  { %1428 = vsyncpa [#allocation15], 1 }
 0x572   :  { %1429 = vsyncpa [#allocation7], 1 }
 0x573   :  { %1430 = vsyncpa [#allocation18], 1 }

</bundles_post_ra>
